<compile_context>
chip_gen: v7x
topology: tpu7x:2x2x1
jax: 0.10.0
libtpu: 0.0.40
codegen_flags: <defaults>
</compile_context>

<pallas_src>
import jax
import jax.numpy as jnp
from jax.experimental import pallas as pl
from jax.experimental.pallas import tpu as pltpu

EPS = 1e-5


def _bn_kernel(x_ref, gamma_ref, beta_ref, o_ref):
    # x_ref: (C_blk, R) -- channels on sublanes, reduced elements on lanes.
    # gamma_ref / beta_ref: (C_blk, 1).
    x = x_ref[...]
    inv_cnt = 1.0 / x.shape[1]

    # Single-pass statistics: one traversal producing both moments.
    sum_x = jnp.sum(x, axis=1, keepdims=True)            # (C_blk, 1)
    sum_x2 = jnp.sum(x * x, axis=1, keepdims=True)        # (C_blk, 1)
    mean = sum_x * inv_cnt
    var = jnp.maximum(sum_x2 * inv_cnt - mean * mean, 0.0)  # biased var, clamped

    inv = jax.lax.rsqrt(var + EPS)                         # EUP slot
    scale = gamma_ref[...] * inv                           # (C_blk, 1)
    bias = beta_ref[...] - mean * scale                    # mean folded into bias

    # Re-read x from VMEM for the elementwise pass (cheap reload; avoids
    # keeping a second full-tensor value live -> no vreg spills).
    o_ref[...] = (x_ref[...] * scale + bias).astype(o_ref.dtype)


def _channel_blocks(c):
    """2-way channel split only on multi-TensorCore chips (v7x)."""
    try:
        kind = jax.devices()[0].device_kind.lower()
    except Exception:
        return 1
    if "v7" in kind and c % 2 == 0 and (c // 2) % 8 == 0:
        return 2
    return 1


def batchnorm2d_pallas(x_nchw, gamma, beta):
    """Training-mode BatchNorm2d forward.

    x_nchw: (N, C, H, W); gamma/beta: (C,).  Per-channel statistics are taken
    over (N, H, W).
    """
    n, c, h, w = x_nchw.shape
    r = n * h * w

    # Channels-on-sublanes, reduced-elements-on-lanes layout.
    # For n == 1 this is just a reshape of the contiguous NCHW tensor.
    x2d = jnp.moveaxis(x_nchw, 0, 1).reshape(c, r)         # (C, N*H*W)
    gamma2d = gamma.reshape(c, 1)
    beta2d = beta.reshape(c, 1)

    nblk = _channel_blocks(c)
    c_blk = c // nblk

    out2d = pl.pallas_call(
        _bn_kernel,
        out_shape=jax.ShapeDtypeStruct((c, r), x_nchw.dtype),
        grid=(nblk,),
        in_specs=[
            pl.BlockSpec((c_blk, r), lambda i: (i, 0)),
            pl.BlockSpec((c_blk, 1), lambda i: (i, 0)),
            pl.BlockSpec((c_blk, 1), lambda i: (i, 0)),
        ],
        out_specs=pl.BlockSpec((c_blk, r), lambda i: (i, 0)),
        compiler_params=pltpu.CompilerParams(
            dimension_semantics=("parallel",)),
    )(x2d, gamma2d, beta2d)

    # Back to NCHW.
    return jnp.moveaxis(out2d.reshape(c, n, h, w), 1, 0)


def _reference(x_nchw, gamma, beta):
    mean = jnp.mean(x_nchw, axis=(0, 2, 3), keepdims=True)
    var = jnp.mean((x_nchw - mean) ** 2, axis=(0, 2, 3), keepdims=True)
    g = gamma.reshape(1, -1, 1, 1)
    b = beta.reshape(1, -1, 1, 1)
    return (x_nchw - mean) * jax.lax.rsqrt(var + EPS) * g + b


if __name__ == "__main__":
    key = jax.random.PRNGKey(0)
    kx, kg, kb = jax.random.split(key, 3)

    N, C, H, W = 1, 224, 14, 14  # matches x424 = torch.randn([1, 224, 14, 14])
    x = jax.random.normal(kx, (N, C, H, W), dtype=jnp.float32)
    # PyTorch default init is ones/zeros; perturb slightly so the affine path
    # is actually exercised.
    gamma = 1.0 + 0.1 * jax.random.normal(kg, (C,), dtype=jnp.float32)
    beta = 0.1 * jax.random.normal(kb, (C,), dtype=jnp.float32)

    out = batchnorm2d_pallas(x, gamma, beta)
    out = jax.block_until_ready(out)

    ref = _reference(x, gamma, beta)
    assert out.shape == (N, C, H, W)
    assert jnp.allclose(out, ref, atol=1e-4, rtol=1e-4)

    print("KERNEL_OK")
</pallas_src>

<mosaic_0001>
module attributes {stable_mosaic.version = 11 : i64} {
  func.func @_bn_kernel(%arg0: i32, %arg1: memref<224x196xf32, #tpu.memory_space<vmem>>, %arg2: memref<224x1xf32, #tpu.memory_space<vmem>>, %arg3: memref<224x1xf32, #tpu.memory_space<vmem>>, %arg4: memref<224x196xf32, #tpu.memory_space<vmem>>) attributes {dimension_semantics = [#tpu.dimension_semantics<parallel>], iteration_bounds = array<i64: 1>, scalar_prefetch = 0 : i64, scratch_operands = 0 : i64, tpu.core_type = #tpu.core_type<tc>, window_params = [{transform_indices = @transform_0, window_bounds = array<i64: 224, 196>}, {transform_indices = @transform_1, window_bounds = array<i64: 224, 1>}, {transform_indices = @transform_2, window_bounds = array<i64: 224, 1>}, {transform_indices = @transform_3, window_bounds = array<i64: 224, 196>}]} {
    %c0 = arith.constant 0 : index
    %c0_0 = arith.constant 0 : index
    %0 = vector.load %arg1[%c0, %c0_0] : memref<224x196xf32, #tpu.memory_space<vmem>>, vector<224x196xf32>
    %cst = arith.constant dense<0.000000e+00> : vector<224xf32>
    %1 = vector.multi_reduction <add>, %0, %cst [1] : vector<224x196xf32> to vector<224xf32>
    %2 = vector.shape_cast %1 : vector<224xf32> to vector<224x1xf32>
    %3 = arith.mulf %0, %0 : vector<224x196xf32>
    %cst_1 = arith.constant dense<0.000000e+00> : vector<224xf32>
    %4 = vector.multi_reduction <add>, %3, %cst_1 [1] : vector<224x196xf32> to vector<224xf32>
    %5 = vector.shape_cast %4 : vector<224xf32> to vector<224x1xf32>
    %cst_2 = arith.constant 0.00510204071 : f32
    %6 = vector.broadcast %cst_2 : f32 to vector<224x1xf32>
    %7 = arith.mulf %2, %6 : vector<224x1xf32>
    %cst_3 = arith.constant 0.00510204071 : f32
    %8 = vector.broadcast %cst_3 : f32 to vector<224x1xf32>
    %9 = arith.mulf %5, %8 : vector<224x1xf32>
    %10 = arith.mulf %7, %7 : vector<224x1xf32>
    %11 = arith.subf %9, %10 : vector<224x1xf32>
    %cst_4 = arith.constant 0.000000e+00 : f32
    %12 = vector.broadcast %cst_4 : f32 to vector<224x1xf32>
    %13 = arith.maximumf %11, %12 : vector<224x1xf32>
    %cst_5 = arith.constant 9.99999974E-6 : f32
    %14 = vector.broadcast %cst_5 : f32 to vector<224x1xf32>
    %15 = arith.addf %13, %14 : vector<224x1xf32>
    %16 = math.rsqrt %15 : vector<224x1xf32>
    %c0_6 = arith.constant 0 : index
    %c0_7 = arith.constant 0 : index
    %17 = vector.load %arg2[%c0_6, %c0_7] : memref<224x1xf32, #tpu.memory_space<vmem>>, vector<224x1xf32>
    %18 = arith.mulf %17, %16 : vector<224x1xf32>
    %c0_8 = arith.constant 0 : index
    %c0_9 = arith.constant 0 : index
    %19 = vector.load %arg3[%c0_8, %c0_9] : memref<224x1xf32, #tpu.memory_space<vmem>>, vector<224x1xf32>
    %20 = arith.mulf %7, %18 : vector<224x1xf32>
    %21 = arith.subf %19, %20 : vector<224x1xf32>
    %c0_10 = arith.constant 0 : index
    %c0_11 = arith.constant 0 : index
    %22 = vector.load %arg1[%c0_10, %c0_11] : memref<224x196xf32, #tpu.memory_space<vmem>>, vector<224x196xf32>
    %23 = vector.broadcast %18 : vector<224x1xf32> to vector<224x196xf32>
    %24 = arith.mulf %22, %23 : vector<224x196xf32>
    %25 = vector.broadcast %21 : vector<224x1xf32> to vector<224x196xf32>
    %26 = arith.addf %24, %25 : vector<224x196xf32>
    %c0_12 = arith.constant 0 : index
    %c0_13 = arith.constant 0 : index
    %27 = vector.load %arg4[%c0_12, %c0_13] : memref<224x196xf32, #tpu.memory_space<vmem>>, vector<224x196xf32>
    tpu.vector_store %arg4[%c0_12, %c0_13], %26 {strides = array<i32>} : memref<224x196xf32, #tpu.memory_space<vmem>>, vector<224x196xf32>,
    return
  }
  func.func @transform_0(%arg0: i32) -> (i32, i32) {
    %c0_i32 = arith.constant 0 : i32
    %c0_i32_0 = arith.constant 0 : i32
    return %arg0, %c0_i32 : i32, i32
  }
  func.func @transform_1(%arg0: i32) -> (i32, i32) {
    %c0_i32 = arith.constant 0 : i32
    %c0_i32_0 = arith.constant 0 : i32
    return %arg0, %c0_i32 : i32, i32
  }
  func.func @transform_2(%arg0: i32) -> (i32, i32) {
    %c0_i32 = arith.constant 0 : i32
    %c0_i32_0 = arith.constant 0 : i32
    return %arg0, %c0_i32 : i32, i32
  }
  func.func @transform_3(%arg0: i32) -> (i32, i32) {
    %c0_i32 = arith.constant 0 : i32
    %c0_i32_0 = arith.constant 0 : i32
    return %arg0, %c0_i32 : i32, i32
  }
}

</mosaic_0001>

<bundles_post_ra>
// kernel: tpu_custom_call.1
= control target key start
LH: loop header
LB: loop body
LE: loop exit
PB: predicated region body
PF: predicated region fallthrough
CT: control target
= control target key end

     0   :  { %vm70_vm0 = vcmask 556032   ;;  %s2723_s0 = inlined_call_operand.vmem [shape: f32[224,196], index: 0, kind: input, shape index: {}]   ;;  %s2724_s1 = inlined_call_operand.vmem [shape: f32[224,1], index: 1, kind: input, shape index: {}]   ;;  %s2725_s2 = inlined_call_operand.vmem [shape: f32[224,1], index: 2, kind: input, shape index: {}]   ;;  %s2726_s3 = inlined_call_operand.vmem [shape: f32[224,196], index: 3, kind: output, shape index: {}]  }
   0x1   :  { %v1278_v0 = vld [vmem:[%s2723_s0 + $0x20] sm:$0xff]  ;;  %v1283_v1 = vld [vmem:[%s2723_s0 + $0x28] sm:$0xff]  ;;  %v1300_v5 = vld [vmem:[%s2723_s0 + $0x30] sm:$0xff] }
   0x2   :  { %v1288_v2 = vld [vmem:[%s2723_s0] sm:$0xff]  ;;  %v79_v3 = vsel %vm70_vm0, %v1283_v1, 0.0  ;;  %v1295_v4 = vld [vmem:[%s2723_s0 + $0x8] sm:$0xff]  ;;  %v1305_v6 = vld [vmem:[%s2723_s0 + $0x38] sm:$0xff] }
   0x3   :  { %v80_v7 = vadd.f32 %v79_v3, %v1278_v0  ;;  %v71_v8 = vsel %vm70_vm0, %v1295_v4, 0.0  ;;  %v83_v9 = vsel %vm70_vm0, %v1305_v6, 0.0  ;;  %v1315_v10 = vld [vmem:[%s2723_s0 + $0x10] sm:$0xff]  ;;  %v1320_v11 = vld [vmem:[%s2723_s0 + $0x18] sm:$0xff]  ;;  %v1333_v15 = vld [vmem:[%s2723_s0 + $0x48] sm:$0xff] }
   0x4   :  { %v72_v12 = vadd.f32 %v71_v8, %v1288_v2  ;;  %v75_v13 = vsel %vm70_vm0, %v1320_v11, 0.0  ;;  %v1328_v14 = vld [vmem:[%s2723_s0 + $0x58] sm:$0xff]  ;;  %v84_v16 = vadd.f32 %v83_v9, %v1300_v5  ;;  %v1340_v18 = vld [vmem:[%s2723_s0 + $0x50] sm:$0xff]  ;;  %v1347_v20 = vld [vmem:[%s2723_s0 + $0x40] sm:$0xff]  ;;  %v87_v21 = vsel %vm70_vm0, %v1333_v15, 0.0 }
   0x5   :  { %81 = vadd.xlane.f32.xlu1 %v80_v7  ;;  %v76_v17 = vadd.f32 %v75_v13, %v1315_v10  ;;  %v91_v19 = vsel %vm70_vm0, %v1328_v14, 0.0  ;;  %v1354_v22 = vld [vmem:[%s2723_s0 + $0x78] sm:$0xff]  ;;  %v1359_v23 = vld [vmem:[%s2723_s0 + $0x68] sm:$0xff]  ;;  %v88_v25 = vadd.f32 %v87_v21, %v1347_v20  ;;  %v1366_v26 = vld [vmem:[%s2723_s0 + $0x70] sm:$0xff] }
   0x6   :  { %73 = vadd.xlane.f32.xlu0 %v72_v12  ;;  %v92_v24 = vadd.f32 %v91_v19, %v1340_v18  ;;  %v99_v27 = vsel %vm70_vm0, %v1354_v22, 0.0  ;;  %v1373_v28 = vld [vmem:[%s2723_s0 + $0x60] sm:$0xff]  ;;  %v95_v29 = vsel %vm70_vm0, %v1359_v23, 0.0  ;;  %v1380_v30 = vld [vmem:[%s2723_s0 + $0x98] sm:$0xff]  ;;  %v1385_v31 = vld [vmem:[%s2723_s0 + $0x88] sm:$0xff] }
   0x7   :  { %v100_v32 = vadd.f32 %v99_v27, %v1366_v26  ;;  %v96_v33 = vadd.f32 %v95_v29, %v1373_v28  ;;  %v1392_v34 = vld [vmem:[%s2723_s0 + $0x90] sm:$0xff]  ;;  %v107_v35 = vsel %vm70_vm0, %v1380_v30, 0.0  ;;  %v1399_v36 = vld [vmem:[%s2723_s0 + $0x80] sm:$0xff]  ;;  %v103_v37 = vsel %vm70_vm0, %v1385_v31, 0.0  ;;  %v1406_v38 = vld [vmem:[%s2723_s0 + $0xb8] sm:$0xff] }
   0x8   :  { %v1411_v39 = vld [vmem:[%s2723_s0 + $0xa8] sm:$0xff]  ;;  %v108_v40 = vadd.f32 %v107_v35, %v1392_v34  ;;  %v104_v41 = vadd.f32 %v103_v37, %v1399_v36  ;;  %v1418_v42 = vld [vmem:[%s2723_s0 + $0xb0] sm:$0xff]  ;;  %v115_v43 = vsel %vm70_vm0, %v1406_v38, 0.0  ;;  %v1425_v44 = vld [vmem:[%s2723_s0 + $0xa0] sm:$0xff] }
   0x9   :  { %85 = vadd.xlane.f32.xlu1 %v84_v16  ;;  %v111_v45 = vsel %vm70_vm0, %v1411_v39, 0.0  ;;  %v1432_v46 = vld [vmem:[%s2723_s0 + $0xd8] sm:$0xff]  ;;  %v1437_v47 = vld [vmem:[%s2723_s0 + $0xc8] sm:$0xff]  ;;  %v116_v48 = vadd.f32 %v115_v43, %v1418_v42  ;;  %v1444_v50 = vld [vmem:[%s2723_s0 + $0xd0] sm:$0xff] }
   0xa   :  { %77 = vadd.xlane.f32.xlu0 %v76_v17  ;;  %v112_v49 = vadd.f32 %v111_v45, %v1425_v44  ;;  %v123_v51 = vsel %vm70_vm0, %v1432_v46, 0.0  ;;  %v1451_v52 = vld [vmem:[%s2723_s0 + $0xc0] sm:$0xff]  ;;  %v119_v53 = vsel %vm70_vm0, %v1437_v47, 0.0  ;;  %v1458_v54 = vld [vmem:[%s2723_s0 + $0xf8] sm:$0xff]  ;;  %v1463_v55 = vld [vmem:[%s2723_s0 + $0xe8] sm:$0xff] }
   0xb   :  { %v124_v56 = vadd.f32 %v123_v51, %v1444_v50  ;;  %v120_v57 = vadd.f32 %v119_v53, %v1451_v52  ;;  %v1470_v58 = vld [vmem:[%s2723_s0 + $0xf0] sm:$0xff]  ;;  %v131_v59 = vsel %vm70_vm0, %v1458_v54, 0.0  ;;  %v1477_v60 = vld [vmem:[%s2723_s0 + $0xe0] sm:$0xff]  ;;  %v127_v61 = vsel %vm70_vm0, %v1463_v55, 0.0  ;;  %v1484_v62 = vld [vmem:[%s2723_s0 + $0x118] sm:$0xff] }
   0xc   :  { %v1489_v63 = vld [vmem:[%s2723_s0 + $0x108] sm:$0xff]  ;;  %v132_v3 = vadd.f32 %v131_v59, %v1470_v58  ;;  %v128_v7 = vadd.f32 %v127_v61, %v1477_v60  ;;  %v1496_v8 = vld [vmem:[%s2723_s0 + $0x110] sm:$0xff]  ;;  %v139_v9 = vsel %vm70_vm0, %v1484_v62, 0.0  ;;  %v1503_v12 = vld [vmem:[%s2723_s0 + $0x100] sm:$0xff] }
   0xd   :  { %93 = vadd.xlane.f32.xlu1 %v92_v24  ;;  %v135_v13 = vsel %vm70_vm0, %v1489_v63, 0.0  ;;  %v1510_v16 = vld [vmem:[%s2723_s0 + $0x138] sm:$0xff]  ;;  %v1515_v17 = vld [vmem:[%s2723_s0 + $0x128] sm:$0xff]  ;;  %v140_v19 = vadd.f32 %v139_v9, %v1496_v8  ;;  %v1522_v24 = vld [vmem:[%s2723_s0 + $0x130] sm:$0xff] }
   0xe   :  { %89 = vadd.xlane.f32.xlu0 %v88_v25  ;;  %v136_v21 = vadd.f32 %v135_v13, %v1503_v12  ;;  %v147_v25 = vsel %vm70_vm0, %v1510_v16, 0.0  ;;  %v1529_v27 = vld [vmem:[%s2723_s0 + $0x120] sm:$0xff]  ;;  %v143_v29 = vsel %vm70_vm0, %v1515_v17, 0.0 }
   0xf   :  { %v148_v35 = vadd.f32 %v147_v25, %v1522_v24  ;;  %v144_v37 = vadd.f32 %v143_v29, %v1529_v27  ;;  %v1555_v43 = vld [vmem:[%s2723_s0 + $0x140] sm:$0xff] }
  0x10   :  { %v1581_v59 = vld [vmem:[%s2723_s0 + $0x160] sm:$0xff] }
  0x11   :  { %101 = vadd.xlane.f32.xlu1 %v100_v32  ;;  %v1536_v32 = vld [vmem:[%s2723_s0 + $0x158] sm:$0xff]  ;;  %v1607_v25 = vld [vmem:[%s2723_s0 + $0x180] sm:$0xff] }
  0x12   :  { %97 = vadd.xlane.f32.xlu0 %v96_v33  ;;  %v1541_v33 = vld [vmem:[%s2723_s0 + $0x148] sm:$0xff]  ;;  %2736 = vst [vmem:[#allocation3_spill] sm:$0xff] %v1607_v25 }
  0x13   :  { %v151_v45 = vsel %vm70_vm0, %v1541_v33, 0.0 }
  0x14   :  { %v152_v53 = vadd.f32 %v151_v45, %v1555_v43 }
  0x15   :  { %109 = vadd.xlane.f32.xlu1 %v108_v40  ;;  %v1548_v40 = vld [vmem:[%s2723_s0 + $0x150] sm:$0xff] }
  0x16   :  { %105 = vadd.xlane.f32.xlu0 %v104_v41  ;;  %v155_v41 = vsel %vm70_vm0, %v1536_v32, 0.0 }
  0x17   :  { %v156_v51 = vadd.f32 %v155_v41, %v1548_v40 }
  0x19   :  { %117 = vadd.xlane.f32.xlu1 %v116_v48  ;;  %v1562_v48 = vld [vmem:[%s2723_s0 + $0x178] sm:$0xff] }
  0x1a   :  { %113 = vadd.xlane.f32.xlu0 %v112_v49  ;;  %v1567_v49 = vld [vmem:[%s2723_s0 + $0x168] sm:$0xff] }
  0x1b   :  { %v159_v61 = vsel %vm70_vm0, %v1567_v49, 0.0 }
  0x1c   :  { %v160_v13 = vadd.f32 %v159_v61, %v1581_v59  ;;  %v1635_v61 = vld [vmem:[%s2723_s0 + $0x1a0] sm:$0xff] }
  0x1d   :  { %125 = vadd.xlane.f32.xlu1 %v124_v56  ;;  %v1574_v56 = vld [vmem:[%s2723_s0 + $0x170] sm:$0xff] }
  0x1e   :  { %121 = vadd.xlane.f32.xlu0 %v120_v57  ;;  %v163_v57 = vsel %vm70_vm0, %v1562_v48, 0.0 }
  0x1f   :  { %v164_v9 = vadd.f32 %v163_v57, %v1574_v56  ;;  %v186_v57 = vmul.f32 %v1320_v11, %v1320_v11 }
  0x21   :  { %133 = vadd.xlane.f32.xlu1 %v132_v3  ;;  %v1588_v3 = vld [vmem:[%s2723_s0 + $0x198] sm:$0xff] }
  0x22   :  { %129 = vadd.xlane.f32.xlu0 %v128_v7  ;;  %v1593_v7 = vld [vmem:[%s2723_s0 + $0x188] sm:$0xff] }
  0x23   :  { %v167_v29 = vsel %vm70_vm0, %v1593_v7, 0.0 }
  0x24   :  { %v168_v45 = vadd.f32 %v167_v29, %v1607_v25  ;;  %v185_v29 = vmul.f32 %v1315_v10, %v1315_v10  ;;  %v183_v25 = vmul.f32 %v1288_v2, %v1288_v2  ;;  %v189_v10 = vmul.f32 %v1300_v5, %v1300_v5 }
  0x25   :  { %141 = vadd.xlane.f32.xlu1 %v140_v19  ;;  %v1600_v19 = vld [vmem:[%s2723_s0 + $0x190] sm:$0xff]  ;;  %v187_v2 = vmul.f32 %v1278_v0, %v1278_v0  ;;  %v193_v5 = vmul.f32 %v1340_v18, %v1340_v18  ;;  %v191_v0 = vmul.f32 %v1347_v20, %v1347_v20  ;;  %v197_v18 = vmul.f32 %v1366_v26, %v1366_v26 }
  0x26   :  { %137 = vadd.xlane.f32.xlu0 %v136_v21  ;;  %2735 = vst [vmem:[#allocation2_spill] sm:$0xff] %v1600_v19  ;;  %v171_v21 = vsel %vm70_vm0, %v1588_v3, 0.0  ;;  %v195_v20 = vmul.f32 %v1373_v28, %v1373_v28  ;;  %v201_v26 = vmul.f32 %v1392_v34, %v1392_v34  ;;  %v199_v28 = vmul.f32 %v1399_v36, %v1399_v36 }
  0x27   :  { %v172_v41 = vadd.f32 %v171_v21, %v1600_v19  ;;  %v205_v34 = vmul.f32 %v1418_v42, %v1418_v42  ;;  %v203_v36 = vmul.f32 %v1425_v44, %v1425_v44  ;;  %v209_v42 = vmul.f32 %v1444_v50, %v1444_v50 }
  0x28   :  { %v207_v44 = vmul.f32 %v1451_v52, %v1451_v52  ;;  %v213_v50 = vmul.f32 %v1470_v58, %v1470_v58  ;;  %v211_v52 = vmul.f32 %v1477_v60, %v1477_v60  ;;  %v217_v58 = vmul.f32 %v1496_v8, %v1496_v8 }
  0x29   :  { %149 = vadd.xlane.f32.xlu1 %v148_v35  ;;  %v1614_v35 = vld [vmem:[%s2723_s0 + $0x1b8] sm:$0xff]  ;;  %v215_v60 = vmul.f32 %v1503_v12, %v1503_v12  ;;  %v221_v8 = vmul.f32 %v1522_v24, %v1522_v24  ;;  %v219_v12 = vmul.f32 %v1529_v27, %v1529_v27  ;;  %v225_v24 = vmul.f32 %v1548_v40, %v1548_v40 }
  0x2a   :  { %145 = vadd.xlane.f32.xlu0 %v144_v37  ;;  %2737 = vst [vmem:[#allocation4_spill] sm:$0xff] %v1614_v35  ;;  %v1619_v37 = vld [vmem:[%s2723_s0 + $0x1a8] sm:$0xff]  ;;  %v223_v27 = vmul.f32 %v1555_v43, %v1555_v43 }
  0x2b   :  { %2738 = vst [vmem:[#allocation5_spill] sm:$0xff] %v1619_v37 }
  0x2d   :  { %157 = vadd.xlane.f32.xlu1 %v156_v51  ;;  %v1626_v51 = vld [vmem:[%s2723_s0 + $0x1b0] sm:$0xff] }
  0x2e   :  { %153 = vadd.xlane.f32.xlu0 %v152_v53  ;;  %v179_v53 = vsel %vm70_vm0, %v1614_v35, 0.0  ;;  %v243_v35 = vsel %vm70_vm0, %v186_v57, 0.0 }
  0x2f   :  { %v180_v21 = vadd.f32 %v179_v53, %v1626_v51 }
  0x31   :  { %165 = vadd.xlane.f32.xlu1 %v164_v9  ;;  %v175_v9 = vsel %vm70_vm0, %v1619_v37, 0.0  ;;  %v190_v37 = vmul.f32 %v1305_v6, %v1305_v6  ;;  %v194_v6 = vmul.f32 %v1328_v14, %v1328_v14  ;;  %v198_v14 = vmul.f32 %v1354_v22, %v1354_v22 }
  0x32   :  { %161 = vadd.xlane.f32.xlu0 %v160_v13  ;;  %v184_v13 = vmul.f32 %v1295_v4, %v1295_v4  ;;  %v176_v11 = vadd.f32 %v175_v9, %v1635_v61  ;;  %v188_v4 = vmul.f32 %v1283_v1, %v1283_v1  ;;  %v192_v1 = vmul.f32 %v1333_v15, %v1333_v15 }
  0x33   :  { %v251_v53 = vsel %vm70_vm0, %v190_v37, 0.0  ;;  %v196_v15 = vmul.f32 %v1359_v23, %v1359_v23  ;;  %v202_v22 = vmul.f32 %v1380_v30, %v1380_v30  ;;  %v200_v23 = vmul.f32 %v1385_v31, %v1385_v31 }
  0x34   :  { %v239_v19 = vsel %vm70_vm0, %v184_v13, 0.0  ;;  %v247_v57 = vsel %vm70_vm0, %v188_v4, 0.0  ;;  %v255_v37 = vsel %vm70_vm0, %v192_v1, 0.0  ;;  %v206_v30 = vmul.f32 %v1406_v38, %v1406_v38 }
  0x35   :  { %173 = vadd.xlane.f32.xlu1 %v172_v41  ;;  %v244_v41 = vadd.f32 %v243_v35, %v185_v29  ;;  %v252_v35 = vadd.f32 %v251_v53, %v189_v10  ;;  %v256_v13 = vadd.f32 %v255_v37, %v191_v0  ;;  %v263_v29 = vsel %vm70_vm0, %v196_v15, 0.0 }
  0x36   :  { %169 = vadd.xlane.f32.xlu0 %v168_v45  ;;  %v240_v45 = vadd.f32 %v239_v19, %v183_v25  ;;  %v248_v19 = vadd.f32 %v247_v57, %v187_v2  ;;  %v259_v25 = vsel %vm70_vm0, %v194_v6, 0.0  ;;  %v264_v4 = vadd.f32 %v263_v29, %v195_v20 }
  0x37   :  { %v260_v9 = vadd.f32 %v259_v25, %v193_v5  ;;  %v271_v10 = vsel %vm70_vm0, %v200_v23, 0.0  ;;  %v204_v31 = vmul.f32 %v1411_v39, %v1411_v39  ;;  %v283_v2 = vsel %vm70_vm0, %v206_v30, 0.0 }
  0x38   :  { %v272_v53 = vadd.f32 %v271_v10, %v199_v28  ;;  %v210_v38 = vmul.f32 %v1432_v46, %v1432_v46  ;;  %v208_v39 = vmul.f32 %v1437_v47, %v1437_v47  ;;  %v284_v57 = vadd.f32 %v283_v2, %v205_v34  ;;  %v2740_v2 = vld [vmem:[#allocation3_spill] sm:$0xff] }
  0x39   :  { %181 = vadd.xlane.f32.xlu1 %v180_v21  ;;  %v267_v21 = vsel %vm70_vm0, %v198_v14, 0.0  ;;  %v279_v6 = vsel %vm70_vm0, %v204_v31, 0.0  ;;  %v214_v46 = vmul.f32 %v1458_v54, %v1458_v54  ;;  %v212_v47 = vmul.f32 %v1463_v55, %v1463_v55 }
  0x3a   :  { %177 = vadd.xlane.f32.xlu0 %v176_v11  ;;  %v268_v11 = vadd.f32 %v267_v21, %v197_v18  ;;  %v280_v1 = vadd.f32 %v279_v6, %v203_v36  ;;  %v287_v5 = vsel %vm70_vm0, %v208_v39, 0.0  ;;  %v218_v54 = vmul.f32 %v1484_v62, %v1484_v62  ;;  %v2741_v36 = vld [vmem:[#allocation4_spill] sm:$0xff]  ;;  %v2742_v6 = vld [vmem:[#allocation5_spill] sm:$0xff] }
  0x3b   :  { %v288_v25 = vadd.f32 %v287_v5, %v207_v44  ;;  %v299_v0 = vsel %vm70_vm0, %v214_v46, 0.0  ;;  %v295_v14 = vsel %vm70_vm0, %v212_v47, 0.0  ;;  %v216_v55 = vmul.f32 %v1489_v63, %v1489_v63 }
  0x3c   :  { %v300_v37 = vadd.f32 %v299_v0, %v213_v50  ;;  %v296_v15 = vadd.f32 %v295_v14, %v211_v52  ;;  %v222_v62 = vmul.f32 %v1510_v16, %v1510_v16  ;;  %v220_v63 = vmul.f32 %v1515_v17, %v1515_v17 }
  0x3d   :  { %245 = vadd.xlane.f32.xlu1 %v244_v41  ;;  %v275_v41 = vsel %vm70_vm0, %v202_v22, 0.0  ;;  %v303_v18 = vsel %vm70_vm0, %v216_v55, 0.0  ;;  %v226_v16 = vmul.f32 %v1536_v32, %v1536_v32  ;;  %v224_v17 = vmul.f32 %v1541_v33, %v1541_v33 }
  0x3e   :  { %241 = vadd.xlane.f32.xlu0 %v240_v45  ;;  %v276_v45 = vadd.f32 %v275_v41, %v201_v26  ;;  %v304_v21 = vadd.f32 %v303_v18, %v215_v60  ;;  %v315_v20 = vsel %vm70_vm0, %v222_v62, 0.0  ;;  %v311_v22 = vsel %vm70_vm0, %v220_v63, 0.0 }
  0x3f   :  { %v316_v29 = vadd.f32 %v315_v20, %v221_v8  ;;  %v312_v23 = vadd.f32 %v311_v22, %v219_v12  ;;  %v230_v32 = vmul.f32 %v1562_v48, %v1562_v48  ;;  %v319_v26 = vsel %vm70_vm0, %v224_v17, 0.0 }
  0x40   :  { %v228_v33 = vmul.f32 %v1567_v49, %v1567_v49  ;;  %v229_v41 = vmul.f32 %v1574_v56, %v1574_v56  ;;  %v320_v28 = vadd.f32 %v319_v26, %v223_v27  ;;  %v227_v48 = vmul.f32 %v1581_v59, %v1581_v59 }
  0x41   :  { %253 = vadd.xlane.f32.xlu1 %v252_v35  ;;  %v291_v35 = vsel %vm70_vm0, %v210_v38, 0.0  ;;  %v331_v43 = vsel %vm70_vm0, %v230_v32, 0.0  ;;  %v234_v30 = vmul.f32 %v1588_v3, %v1588_v3  ;;  %v232_v10 = vmul.f32 %v1593_v7, %v1593_v7 }
  0x42   :  { %249 = vadd.xlane.f32.xlu0 %v248_v19  ;;  %v292_v19 = vadd.f32 %v291_v35, %v209_v42  ;;  %v327_v49 = vsel %vm70_vm0, %v228_v33, 0.0  ;;  %v332_v31 = vadd.f32 %v331_v43, %v229_v41  ;;  %v231_v59 = vmul.f32 %v2740_v2, %v2740_v2 }
  0x43   :  { %v328_v34 = vadd.f32 %v327_v49, %v227_v48  ;;  %v238_v3 = vmul.f32 %v2741_v36, %v2741_v36  ;;  %v335_v38 = vsel %vm70_vm0, %v232_v10, 0.0  ;;  %v236_v7 = vmul.f32 %v2742_v6, %v2742_v6 }
  0x44   :  { %v336_v42 = vadd.f32 %v335_v38, %v231_v59  ;;  %v235_v35 = vmul.f32 %v1635_v61, %v1635_v61 }
  0x45   :  { %261 = vadd.xlane.f32.xlu1 %v260_v9  ;;  %v307_v9 = vsel %vm70_vm0, %v218_v54, 0.0  ;;  %v343_v44 = vsel %vm70_vm0, %v236_v7, 0.0 }
  0x46   :  { %257 = vadd.xlane.f32.xlu0 %v256_v13  ;;  %v308_v13 = vadd.f32 %v307_v9, %v217_v58  ;;  %v344_v5 = vadd.f32 %v343_v44, %v235_v35 }
  0x49   :  { %269 = vadd.xlane.f32.xlu1 %v268_v11  ;;  %v323_v11 = vsel %vm70_vm0, %v226_v16, 0.0 }
  0x4a   :  { %265 = vadd.xlane.f32.xlu0 %v264_v4  ;;  %v1254_v4 = vmov 0   ;;  %v324_v40 = vadd.f32 %v323_v11, %v225_v24 }
  0x4b   :  { %1141 = vset.pattern.permute.xlu1 %v1254_v4  ;;  %1140 = vset.pattern.permute.xlu0 %v1254_v4 }
  0x4d   :  { %277 = vadd.xlane.f32.xlu1 %v276_v45  ;;  %v2739_v45 = vld [vmem:[#allocation2_spill] sm:$0xff] }
  0x4e   :  { %273 = vadd.xlane.f32.xlu0 %v272_v53  ;;  %v233_v56 = vmul.f32 %v2739_v45, %v2739_v45  ;;  %v339_v53 = vsel %vm70_vm0, %v234_v30, 0.0 }
  0x50   :  { %v340_v39 = vadd.f32 %v339_v53, %v233_v56 }
  0x51   :  { %285 = vadd.xlane.f32.xlu1 %v284_v57  ;;  %v237_v57 = vmul.f32 %v1626_v51, %v1626_v51 }
  0x52   :  { %281 = vadd.xlane.f32.xlu0 %v280_v1  ;;  %v347_v1 = vsel %vm70_vm0, %v238_v3, 0.0 }
  0x53   :  { %v348_v46 = vadd.f32 %v347_v1, %v237_v57 }
  0x55   :  { %293 = vadd.xlane.f32.xlu1 %v292_v19 }
  0x56   :  { %289 = vadd.xlane.f32.xlu0 %v288_v25 }
  0x59   :  { %301 = vadd.xlane.f32.xlu1 %v300_v37 }
  0x5a   :  { %297 = vadd.xlane.f32.xlu0 %v296_v15 }
  0x5d   :  { %309 = vadd.xlane.f32.xlu1 %v308_v13 }
  0x5e   :  { %305 = vadd.xlane.f32.xlu0 %v304_v21 }
  0x61   :  { %317 = vadd.xlane.f32.xlu1 %v316_v29 }
  0x62   :  { %313 = vadd.xlane.f32.xlu0 %v312_v23 }
  0x65   :  { %325 = vadd.xlane.f32.xlu1 %v324_v40 }
  0x66   :  { %321 = vadd.xlane.f32.xlu0 %v320_v28 }
  0x69   :  { %333 = vadd.xlane.f32.xlu1 %v332_v31 }
  0x6a   :  { %329 = vadd.xlane.f32.xlu0 %v328_v34 }
  0x6d   :  { %341 = vadd.xlane.f32.xlu1 %v340_v39 }
  0x6e   :  { %337 = vadd.xlane.f32.xlu0 %v336_v42 }
  0x71   :  { %349 = vadd.xlane.f32.xlu1 %v348_v46 }
  0x72   :  { %345 = vadd.xlane.f32.xlu0 %v344_v5 }
  0x92   :  { %v82_v47 = vpop.xlane.xlu1 %81 }
  0x93   :  { %v74_v19 = vpop.xlane.xlu0 %73  ;;  %v1829_v4 = vmul.f32 0.0051020407, %v82_v47 }
  0x94   :  { %v1823_v23 = vmul.f32 0.0051020407, %v74_v19 }
  0x95   :  { %v409_v56 = vmul.f32 %v1829_v4, %v1829_v4 }
  0x96   :  { %v86_v50 = vpop.xlane.xlu1 %85  ;;  %v407_v40 = vmul.f32 %v1823_v23, %v1823_v23 }
  0x97   :  { %v78_v25 = vpop.xlane.xlu0 %77  ;;  %v1825_v27 = vmul.f32 0.0051020407, %v86_v50 }
  0x98   :  { %v1819_v29 = vmul.f32 0.0051020407, %v78_v25 }
  0x99   :  { %v410_v49 = vmul.f32 %v1825_v27, %v1825_v27 }
  0x9a   :  { %v94_v51 = vpop.xlane.xlu1 %93  ;;  %v408_v32 = vmul.f32 %v1819_v29, %v1819_v29 }
  0x9b   :  { %v90_v0 = vpop.xlane.xlu0 %89  ;;  %v1833_v43 = vmul.f32 0.0051020407, %v94_v51 }
  0x9c   :  { %v1839_v34 = vmul.f32 0.0051020407, %v90_v0 }
  0x9d   :  { %v412_v3 = vmul.f32 %v1833_v43, %v1833_v43 }
  0x9e   :  { %v1779_v52 = vpop.xlane.xlu1 %101  ;;  %v411_v35 = vmul.f32 %v1839_v34, %v1839_v34 }
  0x9f   :  { %v98_v54 = vpop.xlane.xlu0 %97  ;;  %v1848_v51 = vmul.f32 0.0051020407, %v1779_v52 }
  0xa0   :  { %v1843_v39 = vmul.f32 0.0051020407, %v98_v54 }
  0xa2   :  { %v1781_v14 = vpop.xlane.xlu1 %109  ;;  %v413_v0 = vmul.f32 %v1843_v39, %v1843_v39 }
  0xa3   :  { %v1783_v61 = vpop.xlane.xlu0 %105  ;;  %v1853_v54 = vmul.f32 0.0051020407, %v1781_v14 }
  0xa6   :  { %v1785_v55 = vpop.xlane.xlu1 %117 }
  0xa7   :  { %v1787_v37 = vpop.xlane.xlu0 %113 }
  0xaa   :  { %v1789_v58 = vpop.xlane.xlu1 %125 }
  0xab   :  { %v1791_v15 = vpop.xlane.xlu0 %121 }
  0xae   :  { %v1793_v9 = vpop.xlane.xlu1 %133 }
  0xaf   :  { %v1795_v60 = vpop.xlane.xlu0 %129 }
  0xb2   :  { %v1797_v62 = vpop.xlane.xlu1 %141 }
  0xb3   :  { %v1799_v18 = vpop.xlane.xlu0 %137 }
  0xb6   :  { %v1801_v63 = vpop.xlane.xlu1 %149 }
  0xb7   :  { %v1803_v13 = vpop.xlane.xlu0 %145 }
  0xba   :  { %v1805_v8 = vpop.xlane.xlu1 %157 }
  0xbb   :  { %v1807_v21 = vpop.xlane.xlu0 %153 }
  0xbe   :  { %v1809_v20 = vpop.xlane.xlu1 %165 }
  0xbf   :  { %v1811_v12 = vpop.xlane.xlu0 %161 }
  0xc2   :  { %v1813_v16 = vpop.xlane.xlu1 %173 }
  0xc3   :  { %v1815_v22 = vpop.xlane.xlu0 %169 }
  0xc6   :  { %v1817_v17 = vpop.xlane.xlu1 %181 }
  0xc7   :  { %v1821_v24 = vpop.xlane.xlu0 %177 }
  0xca   :  { %v246_v11 = vpop.xlane.xlu1 %245 }
  0xcb   :  { %v380_v26 = vmul.f32 0.0051020407, %v246_v11  ;;  %v242_v33 = vpop.xlane.xlu0 %241 }
  0xcc   :  { %v379_v41 = vmul.f32 0.0051020407, %v242_v33 }
  0xcd   :  { %v436_v28 = vsub.f32 %v380_v26, %v408_v32  ;;  %v1856_v32 = vmul.f32 0.0051020407, %v1783_v61  ;;  %v548_v61 = vld [vmem:[%s2724_s1 + $0x8] sm:$0xff] }
  0xce   :  { %v435_v48 = vsub.f32 %v379_v41, %v407_v40  ;;  %v254_v30 = vpop.xlane.xlu1 %253 }
  0xcf   :  { %v464_v10 = vmax.f32 %v436_v28, 0.0  ;;  %v382_v31 = vmul.f32 0.0051020407, %v254_v30  ;;  %v250_v45 = vpop.xlane.xlu0 %249  ;;  %v416_v30 = vmul.f32 %v1853_v54, %v1853_v54 }
  0xd0   :  { %v463_v53 = vmax.f32 %v435_v48, 0.0  ;;  %v381_v2 = vmul.f32 0.0051020407, %v250_v45  ;;  %v415_v45 = vmul.f32 %v1856_v32, %v1856_v32 }
  0xd1   :  { %v492_v59 = vadd.f32 1e-05, %v464_v10  ;;  %v438_v36 = vsub.f32 %v382_v31, %v410_v49  ;;  %v1861_v49 = vmul.f32 0.0051020407, %v1785_v55  ;;  %v414_v31 = vmul.f32 %v1848_v51, %v1848_v51  ;;  %v547_v55 = vld [vmem:[%s2724_s1] sm:$0xff] }
  0xd2   :  { %v491_v38 = vadd.f32 1e-05, %v463_v53  ;;  %v437_v6 = vsub.f32 %v381_v2, %v409_v56  ;;  %v262_v7 = vpop.xlane.xlu1 %261  ;;  %v1871_v56 = vmul.f32 0.0051020407, %v1787_v37  ;;  %v1877_v2 = vmul.f32 0.0051020407, %v1789_v58 }
  0xd3   :  { %1142 = vrsqrt.f32 %v492_v59  ;;  %v466_v57 = vmax.f32 %v438_v36, 0.0  ;;  %v384_v42 = vmul.f32 0.0051020407, %v262_v7  ;;  %v258_v1 = vpop.xlane.xlu0 %257  ;;  %v418_v37 = vmul.f32 %v1861_v49, %v1861_v49 }
  0xd4   :  { %1144 = vrsqrt.f32 %v491_v38  ;;  %v465_v44 = vmax.f32 %v437_v6, 0.0  ;;  %v383_v46 = vmul.f32 0.0051020407, %v258_v1  ;;  %v417_v58 = vmul.f32 %v1871_v56, %v1871_v56 }
  0xd5   :  { %v440_v5 = vsub.f32 %v384_v42, %v412_v3  ;;  %v494_v47 = vadd.f32 1e-05, %v466_v57 }
  0xd6   :  { %v493_v19 = vadd.f32 1e-05, %v465_v44  ;;  %v439_v50 = vsub.f32 %v383_v46, %v411_v35  ;;  %v270_v25 = vpop.xlane.xlu1 %269 }
  0xd7   :  { %v266_v11 = vpop.xlane.xlu0 %265  ;;  %v468_v40 = vmax.f32 %v440_v5, 0.0  ;;  %v386_v28 = vmul.f32 0.0051020407, %v270_v25  ;;  %v1888_v5 = vmul.f32 0.0051020407, %v1793_v9 }
  0xd8   :  { %1146 = vrsqrt.f32 %v493_v19  ;;  %v467_v26 = vmax.f32 %v439_v50, 0.0  ;;  %v385_v33 = vmul.f32 0.0051020407, %v266_v11 }
  0xd9   :  { %1148 = vrsqrt.f32 %v494_v47  ;;  %v496_v59 = vadd.f32 1e-05, %v468_v40  ;;  %v442_v6 = vsub.f32 %v386_v28, %v414_v31  ;;  %v549_v47 = vld [vmem:[%s2724_s1 + $0x10] sm:$0xff]  ;;  %v550_v31 = vld [vmem:[%s2724_s1 + $0x18] sm:$0xff] }
  0xda   :  { %v495_v41 = vadd.f32 1e-05, %v467_v26  ;;  %v441_v48 = vsub.f32 %v385_v33, %v413_v0  ;;  %v278_v52 = vpop.xlane.xlu1 %277  ;;  %v420_v26 = vmul.f32 %v1877_v2, %v1877_v2 }
  0xdb   :  { %v388_v14 = vmul.f32 0.0051020407, %v278_v52  ;;  %v274_v10 = vpop.xlane.xlu0 %273  ;;  %v470_v33 = vmax.f32 %v442_v6, 0.0 }
  0xdc   :  { %v387_v3 = vmul.f32 0.0051020407, %v274_v10  ;;  %1150 = vrsqrt.f32 %v495_v41  ;;  %v469_v7 = vmax.f32 %v441_v48, 0.0  ;;  %v422_v10 = vmul.f32 %v1888_v5, %v1888_v5 }
  0xdd   :  { %v1143_v53 = vpop.eup %1142  ;;  %v444_v36 = vsub.f32 %v388_v14, %v416_v30  ;;  %1152 = vrsqrt.f32 %v496_v59  ;;  %v1900_v14 = vmul.f32 0.0051020407, %v1791_v15  ;;  %v498_v15 = vadd.f32 1e-05, %v470_v33 }
  0xde   :  { %v1145_v38 = vpop.eup %1144  ;;  %v286_v57 = vpop.xlane.xlu1 %285  ;;  %v1879_v42 = vmul.f32 %v1143_v53, %v548_v61  ;;  %v443_v50 = vsub.f32 %v387_v3, %v415_v45  ;;  %v497_v9 = vadd.f32 1e-05, %v469_v7  ;;  %v1905_v61 = vmul.f32 0.0051020407, %v1795_v60 }
  0xdf   :  { %v472_v1 = vmax.f32 %v444_v36, 0.0  ;;  %v390_v35 = vmul.f32 0.0051020407, %v286_v57  ;;  %v282_v44 = vpop.xlane.xlu0 %281  ;;  %v1883_v46 = vmul.f32 %v1145_v38, %v547_v55  ;;  %v1912_v36 = vmul.f32 0.0051020407, %v1797_v62 }
  0xe0   :  { %694 = vperm.xlu1 %1141, %v1879_v42   ;;  %v389_v0 = vmul.f32 0.0051020407, %v282_v44  ;;  %v471_v45 = vmax.f32 %v443_v50, 0.0  ;;  %v1921_v62 = vmul.f32 0.0051020407, %v1799_v18 }
  0xe1   :  { %v500_v19 = vadd.f32 1e-05, %v472_v1  ;;  %v446_v25 = vsub.f32 %v390_v35, %v418_v37  ;;  %689 = vperm.xlu0 %1140, %v1883_v46   ;;  %v419_v1 = vmul.f32 %v1900_v14, %v1900_v14  ;;  %v421_v35 = vmul.f32 %v1905_v61, %v1905_v61 }
  0xe2   :  { %v1147_v11 = vpop.eup %1146  ;;  %v294_v40 = vpop.xlane.xlu1 %293  ;;  %v445_v53 = vsub.f32 %v389_v0, %v417_v58  ;;  %v1924_v44 = vmul.f32 0.0051020407, %v1801_v63  ;;  %v551_v58 = vld [vmem:[%s2724_s1 + $0x20] sm:$0xff]  ;;  %v424_v0 = vmul.f32 %v1912_v36, %v1912_v36 }
  0xe3   :  { %1154 = vrsqrt.f32 %v500_v19  ;;  %v474_v41 = vmax.f32 %v446_v25, 0.0  ;;  %v392_v28 = vmul.f32 0.0051020407, %v294_v40  ;;  %v290_v48 = vpop.xlane.xlu0 %289  ;;  %v1897_v52 = vmul.f32 %v1147_v11, %v549_v47  ;;  %v1149_v30 = vpop.eup %1148 }
  0xe4   :  { %1156 = vrsqrt.f32 %v497_v9  ;;  %v391_v3 = vmul.f32 0.0051020407, %v290_v48  ;;  %v1914_v57 = vmul.f32 %v1149_v30, %v550_v31  ;;  %v499_v47 = vadd.f32 1e-05, %v471_v45  ;;  %v552_v45 = vld [vmem:[%s2724_s1 + $0x28] sm:$0xff] }
  0xe5   :  { %v502_v55 = vadd.f32 1e-05, %v474_v41  ;;  %v448_v59 = vsub.f32 %v392_v28, %v420_v26  ;;  %699 = vperm.xlu1 %1141, %v1897_v52   ;;  %v473_v19 = vmax.f32 %v445_v53, 0.0  ;;  %v556_v41 = vld [vmem:[%s2724_s1 + $0x48] sm:$0xff]  ;;  %v423_v48 = vmul.f32 %v1921_v62, %v1921_v62 }
  0xe6   :  { %v302_v38 = vpop.xlane.xlu1 %301  ;;  %v1151_v37 = vpop.eup %1150  ;;  %v447_v11 = vsub.f32 %v391_v3, %v419_v1  ;;  %v426_v30 = vmul.f32 %v1924_v44, %v1924_v44  ;;  %v1945_v31 = vmul.f32 0.0051020407, %v1805_v8 }
  0xe7   :  { %1158 = vrsqrt.f32 %v502_v55  ;;  %v476_v60 = vmax.f32 %v448_v59, 0.0  ;;  %v394_v6 = vmul.f32 0.0051020407, %v302_v38  ;;  %v298_v7 = vpop.xlane.xlu0 %297  ;;  %v1932_v40 = vmul.f32 %v1151_v37, %v551_v58  ;;  %v1153_v28 = vpop.eup %1152  ;;  %v558_v58 = vld [vmem:[%s2724_s1 + $0x58] sm:$0xff] }
  0xe8   :  { %1160 = vrsqrt.f32 %v498_v15  ;;  %v393_v18 = vmul.f32 0.0051020407, %v298_v7  ;;  %v501_v53 = vadd.f32 1e-05, %v473_v19  ;;  %v475_v3 = vmax.f32 %v447_v11, 0.0 }
  0xe9   :  { %v504_v50 = vadd.f32 1e-05, %v476_v60  ;;  %v450_v25 = vsub.f32 %v394_v6, %v422_v10  ;;  %704 = vperm.xlu1 %1141, %v1914_v57   ;;  %v1942_v10 = vmul.f32 0.0051020407, %v1803_v13  ;;  %v1953_v1 = vmul.f32 %v1153_v28, %v552_v45 }
  0xea   :  { %v310_v26 = vpop.xlane.xlu1 %309  ;;  %v449_v38 = vsub.f32 %v393_v18, %v421_v35  ;;  %v428_v35 = vmul.f32 %v1945_v31, %v1945_v31 }
  0xeb   :  { %1162 = vrsqrt.f32 %v504_v50  ;;  %v478_v63 = vmax.f32 %v450_v25, 0.0  ;;  %v396_v33 = vmul.f32 0.0051020407, %v310_v26  ;;  %v306_v9 = vpop.xlane.xlu0 %305  ;;  %2743 = vst [vmem:[#allocation2_spill] sm:$0xff] %v1942_v10  ;;  %v425_v19 = vmul.f32 %v1942_v10, %v1942_v10 }
  0xec   :  { %1164 = vrsqrt.f32 %v499_v47  ;;  %v395_v60 = vmul.f32 0.0051020407, %v306_v9  ;;  %v1963_v50 = vmul.f32 0.0051020407, %v1807_v21  ;;  %v1966_v25 = vmul.f32 0.0051020407, %v1809_v20 }
  0xed   :  { %v1155_v55 = vpop.eup %1154  ;;  %v506_v59 = vadd.f32 1e-05, %v478_v63  ;;  %v452_v15 = vsub.f32 %v396_v33, %v424_v0  ;;  %709 = vperm.xlu1 %1141, %v1932_v40   ;;  %v553_v0 = vld [vmem:[%s2724_s1 + $0x30] sm:$0xff]  ;;  %v503_v33 = vadd.f32 1e-05, %v475_v3  ;;  %v477_v9 = vmax.f32 %v449_v38, 0.0 }
  0xee   :  { %v318_v6 = vpop.xlane.xlu1 %317  ;;  %v1951_v13 = vmul.f32 %v1155_v55, %v556_v41  ;;  %v1157_v47 = vpop.eup %1156  ;;  %2744 = vst [vmem:[#allocation3_spill] sm:$0xff] %v1963_v50  ;;  %v451_v21 = vsub.f32 %v395_v60, %v423_v48  ;;  %v430_v48 = vmul.f32 %v1966_v25, %v1966_v25  ;;  %v1985_v3 = vmul.f32 0.0051020407, %v1813_v16  ;;  %v554_v38 = vld [vmem:[%s2724_s1 + $0x38] sm:$0xff] }
  0xef   :  { %1166 = vrsqrt.f32 %v506_v59  ;;  %v480_v8 = vmax.f32 %v452_v15, 0.0  ;;  %v398_v7 = vmul.f32 0.0051020407, %v318_v6  ;;  %v314_v37 = vpop.xlane.xlu0 %313  ;;  %v1975_v59 = vmul.f32 %v1157_v47, %v553_v0 }
  0xf0   :  { %734 = vperm.xlu0 %1140, %v1951_v13   ;;  %1168 = vrsqrt.f32 %v501_v53  ;;  %v397_v63 = vmul.f32 0.0051020407, %v314_v37  ;;  %v560_v53 = vld [vmem:[%s2724_s1 + $0x68] sm:$0xff]  ;;  %v427_v15 = vmul.f32 %v1963_v50, %v1963_v50  ;;  %v479_v47 = vmax.f32 %v451_v21, 0.0 }
  0xf1   :  { %v1159_v11 = vpop.eup %1158  ;;  %v508_v18 = vadd.f32 1e-05, %v480_v8  ;;  %v454_v26 = vsub.f32 %v398_v7, %v426_v30  ;;  %714 = vperm.xlu1 %1141, %v1953_v1  }
  0xf2   :  { %v326_v41 = vpop.xlane.xlu1 %325  ;;  %v1973_v28 = vmul.f32 %v1159_v11, %v558_v58  ;;  %v1161_v30 = vpop.eup %1160  ;;  %v453_v8 = vsub.f32 %v397_v63, %v425_v19  ;;  %v505_v58 = vadd.f32 1e-05, %v477_v9  ;;  %v562_v19 = vld [vmem:[%s2724_s1 + $0x78] sm:$0xff]  ;;  %v432_v63 = vmul.f32 %v1985_v3, %v1985_v3  ;;  %v555_v9 = vld [vmem:[%s2724_s1 + $0x40] sm:$0xff] }
  0xf3   :  { %1170 = vrsqrt.f32 %v508_v18  ;;  %v482_v20 = vmax.f32 %v454_v26, 0.0  ;;  %v400_v45 = vmul.f32 0.0051020407, %v326_v41  ;;  %v322_v55 = vpop.xlane.xlu0 %321  ;;  %v1994_v50 = vmul.f32 %v1161_v30, %v554_v38 }
  0xf4   :  { %744 = vperm.xlu0 %1140, %v1973_v28   ;;  %v399_v37 = vmul.f32 0.0051020407, %v322_v55  ;;  %1172 = vrsqrt.f32 %v503_v33  ;;  %v2005_v33 = vmul.f32 0.0051020407, %v1817_v17 }
  0xf5   :  { %v1163_v60 = vpop.eup %1162  ;;  %v510_v6 = vadd.f32 1e-05, %v482_v20  ;;  %v456_v7 = vsub.f32 %v400_v45, %v428_v35  ;;  %719 = vperm.xlu1 %1141, %v1975_v59   ;;  %v2000_v35 = vmul.f32 0.0051020407, %v1811_v12  ;;  %v481_v20 = vmax.f32 %v453_v8, 0.0 }
  0xf6   :  { %v334_v0 = vpop.xlane.xlu1 %333  ;;  %v1992_v11 = vmul.f32 %v1163_v60, %v560_v53  ;;  %v1165_v16 = vpop.eup %1164  ;;  %v455_v55 = vsub.f32 %v399_v37, %v427_v15  ;;  %v507_v12 = vadd.f32 1e-05, %v479_v47  ;;  %v564_v15 = vld [vmem:[%s2724_s1 + $0x88] sm:$0xff]  ;;  %v2022_v8 = vmul.f32 0.0051020407, %v1815_v22  ;;  %v557_v47 = vld [vmem:[%s2724_s1 + $0x50] sm:$0xff] }
  0xf7   :  { %1174 = vrsqrt.f32 %v510_v6  ;;  %v484_v18 = vmax.f32 %v456_v7, 0.0  ;;  %v402_v26 = vmul.f32 0.0051020407, %v334_v0  ;;  %v330_v41 = vpop.xlane.xlu0 %329  ;;  %2745 = vst [vmem:[#allocation4_spill] sm:$0xff] %v2000_v35  ;;  %v2014_v10 = vmul.f32 %v1165_v16, %v555_v9 }
  0xf8   :  { %754 = vperm.xlu0 %1140, %v1992_v11   ;;  %1176 = vrsqrt.f32 %v505_v58  ;;  %v401_v30 = vmul.f32 0.0051020407, %v330_v41  ;;  %2746 = vst [vmem:[#allocation5_spill] sm:$0xff] %v2022_v8  ;;  %v434_v37 = vmul.f32 %v2005_v33, %v2005_v33  ;;  %v2027_v58 = vmul.f32 0.0051020407, %v1821_v24 }
  0xf9   :  { %v1167_v21 = vpop.eup %1166  ;;  %v512_v45 = vadd.f32 1e-05, %v484_v18  ;;  %v458_v53 = vsub.f32 %v402_v26, %v430_v48  ;;  %724 = vperm.xlu1 %1141, %v1994_v50   ;;  %v429_v48 = vmul.f32 %v2000_v35, %v2000_v35  ;;  %v509_v18 = vadd.f32 1e-05, %v481_v20  ;;  %v566_v20 = vld [vmem:[%s2724_s1 + $0x98] sm:$0xff] }
  0xfa   :  { %v342_v38 = vpop.xlane.xlu1 %341  ;;  %v2012_v60 = vmul.f32 %v1167_v21, %v562_v19  ;;  %v1169_v17 = vpop.eup %1168  ;;  %v483_v26 = vmax.f32 %v455_v55, 0.0 }
  0xfb   :  { %1178 = vrsqrt.f32 %v512_v45  ;;  %v486_v6 = vmax.f32 %v458_v53, 0.0  ;;  %v404_v7 = vmul.f32 0.0051020407, %v342_v38  ;;  %v338_v0 = vpop.xlane.xlu0 %337  ;;  %v457_v22 = vsub.f32 %v401_v30, %v429_v48 }
  0xfc   :  { %764 = vperm.xlu0 %1140, %v2012_v60   ;;  %1180 = vrsqrt.f32 %v507_v12  ;;  %v403_v9 = vmul.f32 0.0051020407, %v338_v0  ;;  %v2036_v35 = vmul.f32 %v1169_v17, %v557_v47  ;;  %v433_v12 = vmul.f32 %v2027_v58, %v2027_v58 }
  0xfd   :  { %v1171_v16 = vpop.eup %1170  ;;  %v514_v41 = vadd.f32 1e-05, %v486_v6  ;;  %v460_v19 = vsub.f32 %v404_v7, %v432_v63  ;;  %729 = vperm.xlu1 %1141, %v2014_v10   ;;  %v431_v63 = vmul.f32 %v2022_v8, %v2022_v8  ;;  %v559_v6 = vld [vmem:[%s2724_s1 + $0x60] sm:$0xff]  ;;  %v511_v7 = vadd.f32 1e-05, %v483_v26 }
  0xfe   :  { %v350_v21 = vpop.xlane.xlu1 %349  ;;  %v2034_v45 = vmul.f32 %v1171_v16, %v564_v15  ;;  %v1173_v55 = vpop.eup %1172  ;;  %v485_v48 = vmax.f32 %v457_v22, 0.0 }
  0xff   :  { %1182 = vrsqrt.f32 %v514_v41  ;;  %v488_v24 = vmax.f32 %v460_v19, 0.0  ;;  %v406_v53 = vmul.f32 0.0051020407, %v350_v21  ;;  %v346_v38 = vpop.xlane.xlu0 %345  ;;  %v459_v47 = vsub.f32 %v403_v9, %v431_v63  ;;  %v570_v63 = vld [vmem:[%s2724_s1 + $0xb8] sm:$0xff] }
 0x100   :  { %v405_v30 = vmul.f32 0.0051020407, %v346_v38  ;;  %774 = vperm.xlu0 %1140, %v2034_v45   ;;  %1184 = vrsqrt.f32 %v509_v18  ;;  %v2052_v21 = vmul.f32 %v1173_v55, %v559_v6  ;;  %v568_v38 = vld [vmem:[%s2724_s1 + $0xa8] sm:$0xff]  ;;  %v513_v9 = vadd.f32 1e-05, %v485_v48  ;;  %v565_v48 = vld [vmem:[%s2724_s1 + $0x90] sm:$0xff] }
 0x101   :  { %v1175_v17 = vpop.eup %1174  ;;  %v516_v0 = vadd.f32 1e-05, %v488_v24  ;;  %v462_v15 = vsub.f32 %v406_v53, %v434_v37  ;;  %739 = vperm.xlu1 %1141, %v2036_v35   ;;  %v561_v37 = vld [vmem:[%s2724_s1 + $0x70] sm:$0xff]  ;;  %v487_v24 = vmax.f32 %v459_v47, 0.0 }
 0x102   :  { %v461_v16 = vsub.f32 %v405_v30, %v433_v12  ;;  %v2050_v41 = vmul.f32 %v1175_v17, %v566_v20  ;;  %v1177_v8 = vpop.eup %1176  ;;  %v563_v30 = vld [vmem:[%s2724_s1 + $0x80] sm:$0xff] }
 0x103   :  { %1186 = vrsqrt.f32 %v516_v0  ;;  %v490_v19 = vmax.f32 %v462_v15, 0.0  ;;  %v2064_v55 = vmul.f32 %v1177_v8, %v561_v37  ;;  %v515_v17 = vadd.f32 1e-05, %v487_v24  ;;  %v572_v15 = vld [vmem:[%s2724_s1 + $0xc8] sm:$0xff]  ;;  %v567_v37 = vld [vmem:[%s2724_s1 + $0xa0] sm:$0xff] }
 0x104   :  { %v489_v18 = vmax.f32 %v461_v16, 0.0  ;;  %784 = vperm.xlu0 %1140, %v2050_v41   ;;  %1188 = vrsqrt.f32 %v511_v7 }
 0x105   :  { %v1179_v26 = vpop.eup %1178  ;;  %v518_v22 = vadd.f32 1e-05, %v490_v19  ;;  %749 = vperm.xlu1 %1141, %v2052_v21  }
 0x106   :  { %v517_v53 = vadd.f32 1e-05, %v489_v18  ;;  %v2062_v20 = vmul.f32 %v1179_v26, %v568_v38  ;;  %v1181_v12 = vpop.eup %1180  ;;  %v574_v18 = vld [vmem:[%s2724_s1 + $0xd8] sm:$0xff]  ;;  %v573_v26 = vld [vmem:[%s2724_s1 + $0xd0] sm:$0xff] }
 0x107   :  { %1190 = vrsqrt.f32 %v518_v22  ;;  %v2076_v0 = vmul.f32 %v1181_v12, %v563_v30  ;;  %v604_v12 = vld [vmem:[%s2725_s2 + $0x8] sm:$0xff] }
 0x108   :  { %1192 = vrsqrt.f32 %v517_v53  ;;  %794 = vperm.xlu0 %1140, %v2062_v20   ;;  %v632_v53 = vmul.f32 %v1879_v42, %v1819_v29 }
 0x109   :  { %v1183_v6 = vpop.eup %1182  ;;  %759 = vperm.xlu1 %1141, %v2064_v55   ;;  %1194 = vrsqrt.f32 %v513_v9 }
 0x10a   :  { %v2074_v7 = vmul.f32 %v1183_v6, %v570_v63  ;;  %v1185_v8 = vpop.eup %1184  ;;  %1196 = vrsqrt.f32 %v515_v17  ;;  %v569_v17 = vld [vmem:[%s2724_s1 + $0xb0] sm:$0xff]  ;;  %v660_v42 = vsub.f32 %v604_v12, %v632_v53  ;;  %v610_v53 = vld [vmem:[%s2725_s2 + $0x38] sm:$0xff] }
 0x10b   :  { %v2088_v38 = vmul.f32 %v1185_v8, %v565_v48  ;;  %v2117_v8 = vld [vmem:[%s2725_s2 + $0xd0] sm:$0xff] }
 0x10c   :  { %804 = vperm.xlu0 %1140, %v2074_v7  }
 0x10d   :  { %v1187_v47 = vpop.eup %1186  ;;  %769 = vperm.xlu1 %1141, %v2076_v0  }
 0x10e   :  { %v2086_v16 = vmul.f32 %v1187_v47, %v572_v15  ;;  %v1189_v19 = vpop.eup %1188  ;;  %v634_v15 = vmul.f32 %v1914_v57, %v1825_v27  ;;  %v606_v47 = vld [vmem:[%s2725_s2 + $0x18] sm:$0xff]  ;;  %v636_v27 = vmul.f32 %v1953_v1, %v1833_v43  ;;  %v631_v43 = vmul.f32 %v1883_v46, %v1823_v23  ;;  %v603_v1 = vld [vmem:[%s2725_s2] sm:$0xff]  ;;  %v605_v23 = vld [vmem:[%s2725_s2 + $0x10] sm:$0xff] }
 0x10f   :  { %v2105_v63 = vmul.f32 %v1189_v19, %v567_v37 }
 0x110   :  { %814 = vperm.xlu0 %1140, %v2086_v16   ;;  %v662_v37 = vsub.f32 %v606_v47, %v634_v15  ;;  %v644_v15 = vmul.f32 %v1992_v11, %v1877_v2  ;;  %v639_v2 = vmul.f32 %v2014_v10, %v1856_v32  ;;  %v620_v32 = vld [vmem:[%s2725_s2 + $0x88] sm:$0xff]  ;;  %v613_v10 = vld [vmem:[%s2725_s2 + $0x50] sm:$0xff] }
 0x111   :  { %v1191_v22 = vpop.eup %1190  ;;  %779 = vperm.xlu1 %1141, %v2088_v38  }
 0x112   :  { %v1193_v9 = vpop.eup %1192  ;;  %v2101_v24 = vmul.f32 %v1191_v22, %v574_v18 }
 0x113   :  { %v601_v30 = vmul.f32 %v1193_v9, %v573_v26  ;;  %v1195_v6 = vpop.eup %1194  ;;  %v608_v26 = vld [vmem:[%s2725_s2 + $0x28] sm:$0xff]  ;;  %v638_v9 = vmul.f32 %v1994_v50, %v1848_v51  ;;  %v633_v50 = vmul.f32 %v1897_v52, %v1829_v4  ;;  %v607_v4 = vld [vmem:[%s2725_s2 + $0x20] sm:$0xff] }
 0x114   :  { %824 = vperm.xlu0 %1140, %v2101_v24   ;;  %v2125_v48 = vmul.f32 %v1195_v6, %v569_v17  ;;  %v1197_v18 = vpop.eup %1196  ;;  %v664_v22 = vsub.f32 %v608_v26, %v636_v27  ;;  %v640_v6 = vmul.f32 %v1951_v13, %v1853_v54  ;;  %v659_v17 = vsub.f32 %v603_v1, %v631_v43  ;;  %v612_v51 = vld [vmem:[%s2725_s2 + $0x48] sm:$0xff]  ;;  %v614_v54 = vld [vmem:[%s2725_s2 + $0x58] sm:$0xff] }
 0x115   :  { %789 = vperm.xlu1 %1141, %v2105_v63   ;;  %v2121_v29 = vmul.f32 %v601_v30, %v2027_v58  ;;  %v571_v58 = vld [vmem:[%s2724_s1 + $0xc0] sm:$0xff]  ;;  %v666_v12 = vsub.f32 %v610_v53, %v638_v9  ;;  %v635_v13 = vmul.f32 %v1932_v40, %v1839_v34  ;;  %v609_v34 = vld [vmem:[%s2725_s2 + $0x30] sm:$0xff]  ;;  %v650_v26 = vmul.f32 %v2050_v41, %v1924_v44 }
 0x116   :  { %v2138_v57 = vmul.f32 %v1197_v18, %v571_v58  ;;  %v668_v46 = vsub.f32 %v612_v51, %v640_v6  ;;  %v646_v18 = vmul.f32 %v2012_v60, %v1888_v5  ;;  %v618_v58 = vld [vmem:[%s2725_s2 + $0x78] sm:$0xff]  ;;  %v641_v5 = vmul.f32 %v2036_v35, %v1871_v56  ;;  %v615_v35 = vld [vmem:[%s2725_s2 + $0x60] sm:$0xff] }
 0x117   :  { %v685_v19 = vsub.f32 %v2117_v8, %v2121_v29  ;;  %v663_v47 = vsub.f32 %v607_v4, %v635_v13  ;;  %v622_v56 = vld [vmem:[%s2725_s2 + $0x98] sm:$0xff]  ;;  %v645_v44 = vmul.f32 %v2064_v55, %v1905_v61  ;;  %v654_v53 = vmul.f32 %v2074_v7, %v1966_v25  ;;  %v619_v55 = vld [vmem:[%s2725_s2 + $0x80] sm:$0xff] }
 0x118   :  { %890 = vperm.xlu0 %1140, %v660_v42   ;;  %v661_v42 = vsub.f32 %v605_v23, %v633_v50  ;;  %v678_v9 = vsub.f32 %v622_v56, %v650_v26  ;;  %v626_v61 = vld [vmem:[%s2725_s2 + $0xb8] sm:$0xff]  ;;  %v656_v1 = vmul.f32 %v2086_v16, %v1985_v3  ;;  %v2747_v25 = vld [vmem:[#allocation2_spill] sm:$0xff]  ;;  %v2748_v3 = vld [vmem:[#allocation3_spill] sm:$0xff] }
 0x119   :  { %799 = vperm.xlu1 %1141, %v2125_v48   ;;  %v649_v7 = vmul.f32 %v2088_v38, %v2747_v25  ;;  %v651_v16 = vmul.f32 %v2105_v63, %v2748_v3  ;;  %v630_v38 = vld [vmem:[%s2725_s2 + $0xd8] sm:$0xff]  ;;  %v623_v23 = vld [vmem:[%s2725_s2 + $0xa0] sm:$0xff]  ;;  %v1204_v3 = vld [vmem:[%s2723_s0 + $0x70] sm:$0xff] }
 0x11a   :  { %v2750_v63 = vld [vmem:[#allocation5_spill] sm:$0xff]  ;;  %v627_v4 = vld [vmem:[%s2725_s2 + $0xc0] sm:$0xff] }
 0x11c   :  { %900 = vperm.xlu0 %1140, %v662_v37   ;;  %v648_v37 = vmul.f32 %v2034_v45, %v1912_v36  ;;  %v643_v36 = vmul.f32 %v2052_v21, %v1900_v14  ;;  %v669_v45 = vsub.f32 %v613_v10, %v641_v5  ;;  %v624_v14 = vld [vmem:[%s2725_s2 + $0xa8] sm:$0xff]  ;;  %v617_v21 = vld [vmem:[%s2725_s2 + $0x70] sm:$0xff] }
 0x11d   :  { %809 = vperm.xlu1 %1141, %v2138_v57  }
 0x11e   :  { %v676_v27 = vsub.f32 %v620_v32, %v648_v37  ;;  %v671_v41 = vsub.f32 %v615_v35, %v643_v36  ;;  %v1199_v35 = vld [vmem:[%s2723_s0 + $0x18] sm:$0xff] }
 0x120   :  { %910 = vperm.xlu0 %1140, %v664_v22   ;;  %v652_v22 = vmul.f32 %v2062_v20, %v1945_v31  ;;  %v647_v31 = vmul.f32 %v2076_v0, %v1921_v62  ;;  %v673_v20 = vsub.f32 %v617_v21, %v645_v44  ;;  %v628_v62 = vld [vmem:[%s2725_s2 + $0xc8] sm:$0xff]  ;;  %v621_v0 = vld [vmem:[%s2725_s2 + $0x90] sm:$0xff] }
 0x121   :  { %819 = vperm.xlu1 %1141, %v601_v30   ;;  %v642_v30 = vmul.f32 %v1973_v28, %v1861_v49  ;;  %v616_v49 = vld [vmem:[%s2725_s2 + $0x68] sm:$0xff]  ;;  %v637_v28 = vmul.f32 %v1975_v59, %v1843_v39  ;;  %v611_v39 = vld [vmem:[%s2725_s2 + $0x40] sm:$0xff]  ;;  %v674_v59 = vsub.f32 %v618_v58, %v646_v18  ;;  %v684_v51 = vsub.f32 %v628_v62, %v656_v1  ;;  %v1200_v21 = vld [vmem:[%s2723_s0 + $0x30] sm:$0xff] }
 0x122   :  { %v672_v40 = vsub.f32 %v616_v49, %v644_v15  ;;  %v667_v60 = vsub.f32 %v611_v39, %v639_v2  ;;  %v680_v43 = vsub.f32 %v624_v14, %v652_v22  ;;  %v675_v6 = vsub.f32 %v619_v55, %v647_v31 }
 0x123   :  { %v670_v52 = vsub.f32 %v614_v54, %v642_v30  ;;  %v665_v11 = vsub.f32 %v609_v34, %v637_v28  ;;  %v677_v50 = vsub.f32 %v621_v0, %v649_v7  ;;  %v2749_v30 = vld [vmem:[#allocation4_spill] sm:$0xff]  ;;  %v655_v54 = vmul.f32 %v2138_v57, %v2750_v63  ;;  %v1203_v7 = vld [vmem:[%s2723_s0 + $0x58] sm:$0xff] }
 0x124   :  { %920 = vperm.xlu0 %1140, %v666_v12   ;;  %v682_v12 = vsub.f32 %v626_v61, %v654_v53 }
 0x125   :  { %885 = vperm.xlu1 %1141, %v659_v17   ;;  %v658_v17 = vmul.f32 %v2101_v24, %v2005_v33  ;;  %v679_v33 = vsub.f32 %v623_v23, %v651_v16  ;;  %v625_v24 = vld [vmem:[%s2725_s2 + $0xb0] sm:$0xff]  ;;  %v1206_v23 = vld [vmem:[%s2723_s0] sm:$0xff] }
 0x128   :  { %930 = vperm.xlu0 %1140, %v668_v46   ;;  %v686_v46 = vsub.f32 %v630_v38, %v658_v17 }
 0x129   :  { %895 = vperm.xlu1 %1141, %v661_v42   ;;  %v653_v42 = vmul.f32 %v2125_v48, %v2749_v30  ;;  %v1207_v30 = vld [vmem:[%s2723_s0 + $0x8] sm:$0xff] }
 0x12b   :  { %v681_v13 = vsub.f32 %v625_v24, %v653_v42 }
 0x12c   :  { %940 = vperm.xlu0 %1140, %v670_v52   ;;  %v683_v52 = vsub.f32 %v627_v4, %v655_v54 }
 0x12d   :  { %905 = vperm.xlu1 %1141, %v663_v47  }
 0x130   :  { %950 = vperm.xlu0 %1140, %v672_v40  }
 0x131   :  { %915 = vperm.xlu1 %1141, %v665_v11  }
 0x134   :  { %960 = vperm.xlu0 %1140, %v674_v59  }
 0x135   :  { %925 = vperm.xlu1 %1141, %v667_v60  }
 0x138   :  { %970 = vperm.xlu0 %1140, %v676_v27  }
 0x139   :  { %935 = vperm.xlu1 %1141, %v669_v45   ;;  %v1198_v45 = vld [vmem:[%s2723_s0 + $0x10] sm:$0xff] }
 0x13c   :  { %980 = vperm.xlu0 %1140, %v678_v9  }
 0x13d   :  { %945 = vperm.xlu1 %1141, %v671_v41  }
 0x140   :  { %990 = vperm.xlu0 %1140, %v680_v43   ;;  %v1201_v43 = vld [vmem:[%s2723_s0 + $0x38] sm:$0xff] }
 0x141   :  { %955 = vperm.xlu1 %1141, %v673_v20  }
 0x144   :  { %1000 = vperm.xlu0 %1140, %v682_v12   ;;  %v1202_v12 = vld [vmem:[%s2723_s0 + $0x50] sm:$0xff] }
 0x145   :  { %965 = vperm.xlu1 %1141, %v675_v6  }
 0x148   :  { %1010 = vperm.xlu0 %1140, %v684_v51  }
 0x149   :  { %975 = vperm.xlu1 %1141, %v677_v50   ;;  %v1205_v50 = vld [vmem:[%s2723_s0 + $0x78] sm:$0xff] }
 0x14c   :  { %1020 = vperm.xlu0 %1140, %v686_v46  }
 0x14d   :  { %985 = vperm.xlu1 %1141, %v679_v33  }
 0x151   :  { %995 = vperm.xlu1 %1141, %v681_v13  }
 0x155   :  { %1005 = vperm.xlu1 %1141, %v683_v52   ;;  %v1208_v52 = vld [vmem:[%s2723_s0 + $0x90] sm:$0xff] }
 0x159   :  { %1015 = vperm.xlu1 %1141, %v685_v19  }
 0x15f   :  { %v695_v48 = vpop.permute.xlu1 %694 }
 0x160   :  { %v690_v49 = vpop.permute.xlu0 %689  ;;  %v829_v56 = vmul.f32 %v1198_v45, %v695_v48  ;;  %v830_v22 = vmul.f32 %v1199_v35, %v695_v48  ;;  %v1211_v45 = vld [vmem:[%s2723_s0 + $0x28] sm:$0xff] }
 0x161   :  { %v827_v46 = vmul.f32 %v1206_v23, %v690_v49  ;;  %v828_v42 = vmul.f32 %v1207_v30, %v690_v49  ;;  %v1210_v49 = vld [vmem:[%s2723_s0 + $0x20] sm:$0xff] }
 0x164   :  { %v2267_v15 = vpop.permute.xlu1 %699 }
 0x168   :  { %v705_v47 = vpop.permute.xlu1 %704 }
 0x169   :  { %v833_v53 = vmul.f32 %v1200_v21, %v705_v47  ;;  %v834_v31 = vmul.f32 %v1201_v43, %v705_v47  ;;  %v1209_v47 = vld [vmem:[%s2723_s0 + $0x98] sm:$0xff]  ;;  %v1212_v21 = vld [vmem:[%s2723_s0 + $0xb0] sm:$0xff] }
 0x16c   :  { %v2269_v28 = vpop.permute.xlu1 %709 }
 0x16f   :  { %v2271_v57 = vpop.permute.xlu0 %734 }
 0x170   :  { %v715_v34 = vpop.permute.xlu1 %714  ;;  %v845_v48 = vmul.f32 %v1208_v52, %v2271_v57 }
 0x171   :  { %v837_v25 = vmul.f32 %v1202_v12, %v715_v34  ;;  %v838_v6 = vmul.f32 %v1203_v7, %v715_v34  ;;  %v846_v34 = vmul.f32 %v1209_v47, %v2271_v57  ;;  %v832_v57 = vmul.f32 %v1211_v45, %v2267_v15 }
 0x173   :  { %v2273_v40 = vpop.permute.xlu0 %744 }
 0x174   :  { %v2275_v18 = vpop.permute.xlu1 %719 }
 0x177   :  { %v2277_v2 = vpop.permute.xlu0 %754 }
 0x178   :  { %v725_v11 = vpop.permute.xlu1 %724 }
 0x179   :  { %v841_v16 = vmul.f32 %v1204_v3, %v725_v11  ;;  %v842_v38 = vmul.f32 %v1205_v50, %v725_v11  ;;  %v831_v11 = vmul.f32 %v1210_v49, %v2267_v15  ;;  %v849_v15 = vmul.f32 %v1212_v21, %v2273_v40 }
 0x17b   :  { %v2279_v58 = vpop.permute.xlu0 %764 }
 0x17c   :  { %v2281_v8 = vpop.permute.xlu1 %729 }
 0x17f   :  { %v2283_v29 = vpop.permute.xlu0 %774 }
 0x180   :  { %v2285_v19 = vpop.permute.xlu1 %739 }
 0x183   :  { %v2287_v39 = vpop.permute.xlu0 %784 }
 0x184   :  { %v2289_v59 = vpop.permute.xlu1 %749 }
 0x187   :  { %v2291_v37 = vpop.permute.xlu0 %794 }
 0x188   :  { %v2293_v5 = vpop.permute.xlu1 %759 }
 0x18b   :  { %v2295_v60 = vpop.permute.xlu0 %804 }
 0x18c   :  { %v2297_v32 = vpop.permute.xlu1 %769 }
 0x18f   :  { %v2299_v10 = vpop.permute.xlu0 %814 }
 0x190   :  { %v2301_v27 = vpop.permute.xlu1 %779 }
 0x193   :  { %v2303_v26 = vpop.permute.xlu0 %824 }
 0x194   :  { %v2305_v36 = vpop.permute.xlu1 %789 }
 0x197   :  { %v891_v9 = vpop.permute.xlu0 %890 }
 0x198   :  { %v2313_v44 = vpop.permute.xlu1 %799  ;;  %v1025_v41 = vadd.f32 %v891_v9, %v829_v56  ;;  %v1026_v14 = vadd.f32 %v891_v9, %v830_v22 }
 0x19a   :  { %1081 = vst [vmem:[%s2726_s3 + $0x10] sm:$0xff] %v1025_v41  ;;  %1082 = vst.msk [vmem:[%s2726_s3 + $0x18] sm:$0xff] %vm70_vm0, %v1026_v14 }
 0x19b   :  { %v901_v20 = vpop.permute.xlu0 %900 }
 0x19c   :  { %v2328_v61 = vpop.permute.xlu1 %809  ;;  %v1029_v55 = vadd.f32 %v901_v20, %v833_v53  ;;  %v1030_v1 = vadd.f32 %v901_v20, %v834_v31  ;;  %v1213_v53 = vld [vmem:[%s2723_s0 + $0xb8] sm:$0xff]  ;;  %v1214_v31 = vld [vmem:[%s2723_s0 + $0x40] sm:$0xff] }
 0x19d   :  { %v850_v43 = vmul.f32 %v1213_v53, %v2273_v40  ;;  %v835_v20 = vmul.f32 %v1214_v31, %v2269_v28 }
 0x19e   :  { %1085 = vst [vmem:[%s2726_s3 + $0x30] sm:$0xff] %v1029_v55  ;;  %1086 = vst.msk [vmem:[%s2726_s3 + $0x38] sm:$0xff] %vm70_vm0, %v1030_v1  ;;  %v1215_v55 = vld [vmem:[%s2723_s0 + $0x48] sm:$0xff] }
 0x19f   :  { %v911_v62 = vpop.permute.xlu0 %910  ;;  %v836_v40 = vmul.f32 %v1215_v55, %v2269_v28  ;;  %v1228_v55 = vld [vmem:[%s2723_s0 + $0x130] sm:$0xff] }
 0x1a0   :  { %v2343_v0 = vpop.permute.xlu1 %819  ;;  %v1033_v17 = vadd.f32 %v911_v62, %v837_v25  ;;  %v1034_v51 = vadd.f32 %v911_v62, %v838_v6 }
 0x1a2   :  { %1089 = vst [vmem:[%s2726_s3 + $0x50] sm:$0xff] %v1033_v17  ;;  %1090 = vst.msk [vmem:[%s2726_s3 + $0x58] sm:$0xff] %vm70_vm0, %v1034_v51  ;;  %v1216_v17 = vld [vmem:[%s2723_s0 + $0xd0] sm:$0xff]  ;;  %v1217_v51 = vld [vmem:[%s2723_s0 + $0xd8] sm:$0xff] }
 0x1a3   :  { %v921_v33 = vpop.permute.xlu0 %920  ;;  %v853_v28 = vmul.f32 %v1216_v17, %v2277_v2  ;;  %v854_v3 = vmul.f32 %v1217_v51, %v2277_v2 }
 0x1a4   :  { %v886_v24 = vpop.permute.xlu1 %885  ;;  %v1037_v63 = vadd.f32 %v921_v33, %v841_v16  ;;  %v1038_v54 = vadd.f32 %v921_v33, %v842_v38  ;;  %v1218_v16 = vld [vmem:[%s2723_s0 + $0x60] sm:$0xff]  ;;  %v1219_v38 = vld [vmem:[%s2723_s0 + $0x68] sm:$0xff] }
 0x1a5   :  { %v1023_v13 = vadd.f32 %v886_v24, %v827_v46  ;;  %v1024_v4 = vadd.f32 %v886_v24, %v828_v42  ;;  %v839_v50 = vmul.f32 %v1218_v16, %v2275_v18  ;;  %v840_v2 = vmul.f32 %v1219_v38, %v2275_v18  ;;  %v1232_v16 = vld [vmem:[%s2723_s0 + $0x150] sm:$0xff] }
 0x1a6   :  { %1093 = vst [vmem:[%s2726_s3 + $0x70] sm:$0xff] %v1037_v63  ;;  %1094 = vst.msk [vmem:[%s2726_s3 + $0x78] sm:$0xff] %vm70_vm0, %v1038_v54  ;;  %v1220_v63 = vld [vmem:[%s2723_s0 + $0xf0] sm:$0xff]  ;;  %v1221_v54 = vld [vmem:[%s2723_s0 + $0xf8] sm:$0xff] }
 0x1a7   :  { %1079 = vst [vmem:[%s2726_s3] sm:$0xff] %v1023_v13  ;;  %1080 = vst.msk [vmem:[%s2726_s3 + $0x8] sm:$0xff] %vm70_vm0, %v1024_v4  ;;  %v931_v56 = vpop.permute.xlu0 %930  ;;  %v857_v18 = vmul.f32 %v1220_v63, %v2279_v58  ;;  %v858_v13 = vmul.f32 %v1221_v54, %v2279_v58  ;;  %v1222_v4 = vld [vmem:[%s2723_s0 + $0x80] sm:$0xff]  ;;  %v1236_v54 = vld [vmem:[%s2723_s0 + $0x170] sm:$0xff] }
 0x1a8   :  { %v896_v35 = vpop.permute.xlu1 %895  ;;  %v1041_v22 = vadd.f32 %v931_v56, %v845_v48  ;;  %v1042_v9 = vadd.f32 %v931_v56, %v846_v34  ;;  %v843_v52 = vmul.f32 %v1222_v4, %v2281_v8  ;;  %v1223_v48 = vld [vmem:[%s2723_s0 + $0x88] sm:$0xff]  ;;  %v1224_v56 = vld [vmem:[%s2723_s0 + $0x110] sm:$0xff] }
 0x1a9   :  { %v1027_v41 = vadd.f32 %v896_v35, %v831_v11  ;;  %v1028_v14 = vadd.f32 %v896_v35, %v832_v57  ;;  %v844_v58 = vmul.f32 %v1223_v48, %v2281_v8  ;;  %v861_v8 = vmul.f32 %v1224_v56, %v2283_v29  ;;  %v1225_v35 = vld [vmem:[%s2723_s0 + $0x118] sm:$0xff]  ;;  %v1240_v56 = vld [vmem:[%s2723_s0 + $0x190] sm:$0xff] }
 0x1aa   :  { %1097 = vst [vmem:[%s2726_s3 + $0x90] sm:$0xff] %v1041_v22  ;;  %1098 = vst.msk [vmem:[%s2726_s3 + $0x98] sm:$0xff] %vm70_vm0, %v1042_v9  ;;  %v862_v22 = vmul.f32 %v1225_v35, %v2283_v29  ;;  %v1226_v9 = vld [vmem:[%s2723_s0 + $0xa0] sm:$0xff] }
 0x1ab   :  { %1083 = vst [vmem:[%s2726_s3 + $0x20] sm:$0xff] %v1027_v41  ;;  %1084 = vst.msk [vmem:[%s2726_s3 + $0x28] sm:$0xff] %vm70_vm0, %v1028_v14  ;;  %v941_v1 = vpop.permute.xlu0 %940  ;;  %v847_v41 = vmul.f32 %v1226_v9, %v2285_v19  ;;  %v1227_v14 = vld [vmem:[%s2723_s0 + $0xa8] sm:$0xff] }
 0x1ac   :  { %v906_v12 = vpop.permute.xlu1 %905  ;;  %v1045_v25 = vadd.f32 %v941_v1, %v849_v15  ;;  %v1046_v7 = vadd.f32 %v941_v1, %v850_v43  ;;  %v848_v29 = vmul.f32 %v1227_v14, %v2285_v19  ;;  %v865_v19 = vmul.f32 %v1228_v55, %v2287_v39 }
 0x1ad   :  { %v1031_v6 = vadd.f32 %v906_v12, %v835_v20  ;;  %v1032_v62 = vadd.f32 %v906_v12, %v836_v40  ;;  %v1229_v40 = vld [vmem:[%s2723_s0 + $0x138] sm:$0xff]  ;;  %v1230_v12 = vld [vmem:[%s2723_s0 + $0xc0] sm:$0xff] }
 0x1ae   :  { %1101 = vst [vmem:[%s2726_s3 + $0xb0] sm:$0xff] %v1045_v25  ;;  %1102 = vst.msk [vmem:[%s2726_s3 + $0xb8] sm:$0xff] %vm70_vm0, %v1046_v7  ;;  %v866_v1 = vmul.f32 %v1229_v40, %v2287_v39  ;;  %v851_v25 = vmul.f32 %v1230_v12, %v2289_v59  ;;  %v1231_v7 = vld [vmem:[%s2723_s0 + $0xc8] sm:$0xff] }
 0x1af   :  { %1087 = vst [vmem:[%s2726_s3 + $0x40] sm:$0xff] %v1031_v6  ;;  %1088 = vst.msk [vmem:[%s2726_s3 + $0x48] sm:$0xff] %vm70_vm0, %v1032_v62  ;;  %v951_v23 = vpop.permute.xlu0 %950  ;;  %v852_v39 = vmul.f32 %v1231_v7, %v2289_v59  ;;  %v869_v59 = vmul.f32 %v1232_v16, %v2291_v37 }
 0x1b0   :  { %v916_v46 = vpop.permute.xlu1 %915  ;;  %v1049_v30 = vadd.f32 %v951_v23, %v853_v28  ;;  %v1050_v42 = vadd.f32 %v951_v23, %v854_v3 }
 0x1b1   :  { %v1035_v33 = vadd.f32 %v916_v46, %v839_v50  ;;  %v1036_v24 = vadd.f32 %v916_v46, %v840_v2  ;;  %v1233_v50 = vld [vmem:[%s2723_s0 + $0x158] sm:$0xff]  ;;  %v1234_v2 = vld [vmem:[%s2723_s0 + $0xe0] sm:$0xff]  ;;  %v1235_v46 = vld [vmem:[%s2723_s0 + $0xe8] sm:$0xff] }
 0x1b2   :  { %1105 = vst [vmem:[%s2726_s3 + $0xd0] sm:$0xff] %v1049_v30  ;;  %1106 = vst.msk [vmem:[%s2726_s3 + $0xd8] sm:$0xff] %vm70_vm0, %v1050_v42  ;;  %v870_v38 = vmul.f32 %v1233_v50, %v2291_v37  ;;  %v855_v23 = vmul.f32 %v1234_v2, %v2293_v5  ;;  %v856_v37 = vmul.f32 %v1235_v46, %v2293_v5  ;;  %v1250_v50 = vld [vmem:[%s2723_s0 + $0x180] sm:$0xff] }
 0x1b3   :  { %1091 = vst [vmem:[%s2726_s3 + $0x60] sm:$0xff] %v1035_v33  ;;  %1092 = vst.msk [vmem:[%s2726_s3 + $0x68] sm:$0xff] %vm70_vm0, %v1036_v24  ;;  %v961_v47 = vpop.permute.xlu0 %960  ;;  %v873_v5 = vmul.f32 %v1236_v54, %v2295_v60 }
 0x1b4   :  { %v926_v34 = vpop.permute.xlu1 %925  ;;  %v1053_v49 = vadd.f32 %v961_v47, %v857_v18  ;;  %v1054_v11 = vadd.f32 %v961_v47, %v858_v13  ;;  %v1237_v13 = vld [vmem:[%s2723_s0 + $0x178] sm:$0xff] }
 0x1b5   :  { %v1039_v45 = vadd.f32 %v926_v34, %v843_v52  ;;  %v1040_v57 = vadd.f32 %v926_v34, %v844_v58  ;;  %v874_v4 = vmul.f32 %v1237_v13, %v2295_v60  ;;  %v1238_v52 = vld [vmem:[%s2723_s0 + $0x100] sm:$0xff]  ;;  %v1239_v58 = vld [vmem:[%s2723_s0 + $0x108] sm:$0xff] }
 0x1b6   :  { %1109 = vst [vmem:[%s2726_s3 + $0xf0] sm:$0xff] %v1053_v49  ;;  %1110 = vst.msk [vmem:[%s2726_s3 + $0xf8] sm:$0xff] %vm70_vm0, %v1054_v11  ;;  %v859_v48 = vmul.f32 %v1238_v52, %v2297_v32  ;;  %v860_v60 = vmul.f32 %v1239_v58, %v2297_v32  ;;  %v877_v32 = vmul.f32 %v1240_v56, %v2299_v10 }
 0x1b7   :  { %1095 = vst [vmem:[%s2726_s3 + $0x80] sm:$0xff] %v1039_v45  ;;  %1096 = vst.msk [vmem:[%s2726_s3 + $0x88] sm:$0xff] %vm70_vm0, %v1040_v57  ;;  %v971_v21 = vpop.permute.xlu0 %970 }
 0x1b8   :  { %v936_v15 = vpop.permute.xlu1 %935  ;;  %v1057_v53 = vadd.f32 %v971_v21, %v861_v8  ;;  %v1058_v43 = vadd.f32 %v971_v21, %v862_v22  ;;  %v1241_v8 = vld [vmem:[%s2723_s0 + $0x198] sm:$0xff]  ;;  %v1242_v22 = vld [vmem:[%s2723_s0 + $0x120] sm:$0xff] }
 0x1b9   :  { %v1043_v31 = vadd.f32 %v936_v15, %v847_v41  ;;  %v1044_v20 = vadd.f32 %v936_v15, %v848_v29  ;;  %v878_v35 = vmul.f32 %v1241_v8, %v2299_v10  ;;  %v863_v9 = vmul.f32 %v1242_v22, %v2301_v27  ;;  %v1243_v41 = vld [vmem:[%s2723_s0 + $0x128] sm:$0xff] }
 0x1ba   :  { %1113 = vst [vmem:[%s2726_s3 + $0x110] sm:$0xff] %v1057_v53  ;;  %1114 = vst.msk [vmem:[%s2726_s3 + $0x118] sm:$0xff] %vm70_vm0, %v1058_v43  ;;  %v864_v10 = vmul.f32 %v1243_v41, %v2301_v27 }
 0x1bb   :  { %1099 = vst [vmem:[%s2726_s3 + $0xa0] sm:$0xff] %v1043_v31  ;;  %1100 = vst.msk [vmem:[%s2726_s3 + $0xa8] sm:$0xff] %vm70_vm0, %v1044_v20  ;;  %v981_v6 = vpop.permute.xlu0 %980  ;;  %v1244_v31 = vld [vmem:[%s2723_s0 + $0x1b0] sm:$0xff]  ;;  %v1245_v20 = vld [vmem:[%s2723_s0 + $0x1b8] sm:$0xff] }
 0x1bc   :  { %v946_v62 = vpop.permute.xlu1 %945  ;;  %v1061_v17 = vadd.f32 %v981_v6, %v865_v19  ;;  %v1062_v28 = vadd.f32 %v981_v6, %v866_v1  ;;  %v881_v27 = vmul.f32 %v1244_v31, %v2303_v26  ;;  %v882_v55 = vmul.f32 %v1245_v20, %v2303_v26  ;;  %v1246_v19 = vld [vmem:[%s2723_s0 + $0x140] sm:$0xff]  ;;  %v1247_v1 = vld [vmem:[%s2723_s0 + $0x148] sm:$0xff] }
 0x1bd   :  { %v1047_v51 = vadd.f32 %v946_v62, %v851_v25  ;;  %v1048_v3 = vadd.f32 %v946_v62, %v852_v39  ;;  %v867_v40 = vmul.f32 %v1246_v19, %v2305_v36  ;;  %v868_v26 = vmul.f32 %v1247_v1, %v2305_v36  ;;  %v1248_v36 = vld [vmem:[%s2723_s0 + $0x160] sm:$0xff] }
 0x1be   :  { %1117 = vst [vmem:[%s2726_s3 + $0x130] sm:$0xff] %v1061_v17  ;;  %1118 = vst.msk [vmem:[%s2726_s3 + $0x138] sm:$0xff] %vm70_vm0, %v1062_v28  ;;  %v871_v17 = vmul.f32 %v1248_v36, %v2313_v44  ;;  %v1249_v28 = vld [vmem:[%s2723_s0 + $0x168] sm:$0xff] }
 0x1bf   :  { %1103 = vst [vmem:[%s2726_s3 + $0xc0] sm:$0xff] %v1047_v51  ;;  %1104 = vst.msk [vmem:[%s2726_s3 + $0xc8] sm:$0xff] %vm70_vm0, %v1048_v3  ;;  %v991_v30 = vpop.permute.xlu0 %990  ;;  %v872_v51 = vmul.f32 %v1249_v28, %v2313_v44  ;;  %v1251_v44 = vld [vmem:[%s2723_s0 + $0x188] sm:$0xff] }
 0x1c0   :  { %v956_v42 = vpop.permute.xlu1 %955  ;;  %v1065_v33 = vadd.f32 %v991_v30, %v869_v59  ;;  %v1066_v24 = vadd.f32 %v991_v30, %v870_v38  ;;  %v875_v38 = vmul.f32 %v1250_v50, %v2328_v61  ;;  %v876_v2 = vmul.f32 %v1251_v44, %v2328_v61  ;;  %v1252_v30 = vld [vmem:[%s2723_s0 + $0x1a0] sm:$0xff]  ;;  %v1253_v61 = vld [vmem:[%s2723_s0 + $0x1a8] sm:$0xff] }
 0x1c1   :  { %v1051_v63 = vadd.f32 %v956_v42, %v855_v23  ;;  %v1052_v18 = vadd.f32 %v956_v42, %v856_v37  ;;  %v879_v42 = vmul.f32 %v1252_v30, %v2343_v0 }
 0x1c2   :  { %1121 = vst [vmem:[%s2726_s3 + $0x150] sm:$0xff] %v1065_v33  ;;  %1122 = vst.msk [vmem:[%s2726_s3 + $0x158] sm:$0xff] %vm70_vm0, %v1066_v24  ;;  %v880_v33 = vmul.f32 %v1253_v61, %v2343_v0 }
 0x1c3   :  { %1107 = vst [vmem:[%s2726_s3 + $0xe0] sm:$0xff] %v1051_v63  ;;  %1108 = vst.msk [vmem:[%s2726_s3 + $0xe8] sm:$0xff] %vm70_vm0, %v1052_v18  ;;  %v1001_v47 = vpop.permute.xlu0 %1000 }
 0x1c4   :  { %v966_v34 = vpop.permute.xlu1 %965  ;;  %v1069_v49 = vadd.f32 %v1001_v47, %v873_v5  ;;  %v1070_v11 = vadd.f32 %v1001_v47, %v874_v4 }
 0x1c5   :  { %v1055_v45 = vadd.f32 %v966_v34, %v859_v48  ;;  %v1056_v57 = vadd.f32 %v966_v34, %v860_v60 }
 0x1c6   :  { %1125 = vst [vmem:[%s2726_s3 + $0x170] sm:$0xff] %v1069_v49  ;;  %1126 = vst.msk [vmem:[%s2726_s3 + $0x178] sm:$0xff] %vm70_vm0, %v1070_v11 }
 0x1c7   :  { %1111 = vst [vmem:[%s2726_s3 + $0x100] sm:$0xff] %v1055_v45  ;;  %1112 = vst.msk [vmem:[%s2726_s3 + $0x108] sm:$0xff] %vm70_vm0, %v1056_v57  ;;  %v1011_v14 = vpop.permute.xlu0 %1010 }
 0x1c8   :  { %v976_v29 = vpop.permute.xlu1 %975  ;;  %v1073_v21 = vadd.f32 %v1011_v14, %v877_v32  ;;  %v1074_v15 = vadd.f32 %v1011_v14, %v878_v35 }
 0x1c9   :  { %v1059_v53 = vadd.f32 %v976_v29, %v863_v9  ;;  %v1060_v43 = vadd.f32 %v976_v29, %v864_v10 }
 0x1ca   :  { %1129 = vst [vmem:[%s2726_s3 + $0x190] sm:$0xff] %v1073_v21  ;;  %1130 = vst.msk [vmem:[%s2726_s3 + $0x198] sm:$0xff] %vm70_vm0, %v1074_v15 }
 0x1cb   :  { %1115 = vst [vmem:[%s2726_s3 + $0x120] sm:$0xff] %v1059_v53  ;;  %1116 = vst.msk [vmem:[%s2726_s3 + $0x128] sm:$0xff] %vm70_vm0, %v1060_v43  ;;  %v1021_v12 = vpop.permute.xlu0 %1020 }
 0x1cc   :  { %v986_v25 = vpop.permute.xlu1 %985  ;;  %v1077_v7 = vadd.f32 %v1021_v12, %v881_v27  ;;  %v1078_v39 = vadd.f32 %v1021_v12, %v882_v55 }
 0x1cd   :  { %v1063_v6 = vadd.f32 %v986_v25, %v867_v40  ;;  %v1064_v62 = vadd.f32 %v986_v25, %v868_v26 }
 0x1ce   :  { %1133 = vst [vmem:[%s2726_s3 + $0x1b0] sm:$0xff] %v1077_v7  ;;  %1134 = vst.msk [vmem:[%s2726_s3 + $0x1b8] sm:$0xff] %vm70_vm0, %v1078_v39 }
 0x1cf   :  { %1119 = vst [vmem:[%s2726_s3 + $0x140] sm:$0xff] %v1063_v6  ;;  %1120 = vst.msk [vmem:[%s2726_s3 + $0x148] sm:$0xff] %vm70_vm0, %v1064_v62 }
 0x1d0   :  { %v996_v3 = vpop.permute.xlu1 %995 }
 0x1d1   :  { %v1067_v16 = vadd.f32 %v996_v3, %v871_v17  ;;  %v1068_v59 = vadd.f32 %v996_v3, %v872_v51 }
 0x1d3   :  { %1123 = vst [vmem:[%s2726_s3 + $0x160] sm:$0xff] %v1067_v16  ;;  %1124 = vst.msk [vmem:[%s2726_s3 + $0x168] sm:$0xff] %vm70_vm0, %v1068_v59 }
 0x1d4   :  { %v1006_v23 = vpop.permute.xlu1 %1005 }
 0x1d5   :  { %v1071_v46 = vadd.f32 %v1006_v23, %v875_v38  ;;  %v1072_v37 = vadd.f32 %v1006_v23, %v876_v2 }
 0x1d7   :  { %1127 = vst [vmem:[%s2726_s3 + $0x180] sm:$0xff] %v1071_v46  ;;  %1128 = vst.msk [vmem:[%s2726_s3 + $0x188] sm:$0xff] %vm70_vm0, %v1072_v37 }
 0x1d8   :  { %v1016_v24 = vpop.permute.xlu1 %1015 }
 0x1d9   :  { %v1075_v63 = vadd.f32 %v1016_v24, %v879_v42  ;;  %v1076_v18 = vadd.f32 %v1016_v24, %v880_v33 }
 0x1db   :  { %1131 = vst [vmem:[%s2726_s3 + $0x1a0] sm:$0xff] %v1075_v63  ;;  %1132 = vst.msk [vmem:[%s2726_s3 + $0x1a8] sm:$0xff] %vm70_vm0, %v1076_v18 }

</bundles_post_ra>
